<compile_context>
chip_gen: v5e
topology: v5e:2x2
jax: 0.10.0
libtpu: 0.0.40
codegen_flags: <defaults>
</compile_context>

<pallas_src>
import functools

import jax
import jax.numpy as jnp
from jax.experimental import pallas as pl
from jax.experimental.pallas import tpu as pltpu

BN_EPS = 1e-5
LANE = 128
_VMEM_LIMIT = 32 * 1024 * 1024  # conservative for v7x (64 MiB physical VMEM)


def _round_up(n, m=LANE):
    return ((n + m - 1) // m) * m


def _pick_block_rows(batch, target=1024):
    """Largest multiple-of-8 divisor of `batch` that is <= target (fallback: batch)."""
    if batch <= target:
        return batch
    t = target - (target % 8)
    while t >= 8:
        if batch % t == 0:
            return t
        t -= 8
    return batch


# ---------------------------------------------------------------------------
# Single fused kernel: phase 0 = BN batch statistics, phase 1 = apply network.
# ---------------------------------------------------------------------------
def _fused_kernel(x_ref, w1_ref, w2_ref, w3_ref, vec_ref, o_ref,
                  h1_s, sum_s, sumsq_s, ss_s,
                  *, tile_b, batch, h1p, h2p, outp):
    p = pl.program_id(0)   # 0 = stats phase, 1 = apply phase
    t = pl.program_id(1)   # batch tile
    row0 = pl.multiple_of(t * tile_b, tile_b)

    @pl.when(p == 0)
    def _stats_phase():
        @pl.when(t == 0)
        def _():
            sum_s[...] = jnp.zeros_like(sum_s)
            sumsq_s[...] = jnp.zeros_like(sumsq_s)

        h1 = jnp.dot(x_ref[...], w1_ref[...],
                     preferred_element_type=jnp.float32) + vec_ref[0:1, :h1p]
        h1_s[pl.ds(row0, tile_b), :] = h1
        sum_s[...] += jnp.sum(h1, axis=0, keepdims=True)
        sumsq_s[...] += jnp.sum(h1 * h1, axis=0, keepdims=True)

    @pl.when(p == 1)
    def _apply_phase():
        @pl.when(t == 0)
        def _():
            # Fold BN (training mode, biased variance) into one scale/shift.
            # TODO(synk): single-pass E[x^2]-E[x]^2 variance can lose precision
            # when |mean| >> std; the pure-JAX reference uses the same formula.
            inv_b = 1.0 / batch
            mean = sum_s[...] * inv_b
            var = jnp.maximum(sumsq_s[...] * inv_b - mean * mean, 0.0)
            scale = vec_ref[1:2, :h1p] * jax.lax.rsqrt(var + BN_EPS)  # gamma lanes pad=0
            shift = vec_ref[2:3, :h1p] - mean * scale                 # beta lanes pad=0
            ss_s[0:1, :] = scale
            ss_s[1:2, :] = shift

        h1 = h1_s[pl.ds(row0, tile_b), :]
        a1 = jnp.maximum(h1 * ss_s[0:1, :] + ss_s[1:2, :], 0.0)   # fused BN + ReLU (f32)
        h2 = jnp.dot(a1.astype(jnp.bfloat16), w2_ref[...],
                     preferred_element_type=jnp.float32) + vec_ref[3:4, :h2p]
        a2 = jnp.maximum(h2, 0.0)
        o_ref[...] = jnp.dot(a2.astype(jnp.bfloat16), w3_ref[...],
                             preferred_element_type=jnp.float32) + vec_ref[4:5, :outp]


# ---------------------------------------------------------------------------
# Wrapper
# ---------------------------------------------------------------------------
def net_forward(x, params, out_dim, *, block_rows=1024):
    """x: [B, in_dim] float32 (unpadded). params: from init_params (padded, pre-transposed)."""
    B, in_dim = x.shape
    w1, w2, w3, vec = params["w1"], params["w2"], params["w3"], params["vec"]
    assert w1.shape[0] == in_dim
    h1p, h2p, outp = w1.shape[1], w2.shape[1], w3.shape[1]
    vp = vec.shape[1]

    tile_b = _pick_block_rows(B, block_rows)
    n_tiles = B // tile_b

    x_bf = x.astype(jnp.bfloat16)   # pre-cast once: halves x HBM/DMA traffic

    kernel = functools.partial(_fused_kernel, tile_b=tile_b, batch=B,
                               h1p=h1p, h2p=h2p, outp=outp)

    out_p = pl.pallas_call(
        kernel,
        out_shape=jax.ShapeDtypeStruct((B, outp), jnp.float32),
        grid_spec=pltpu.PrefetchScalarGridSpec(
            num_scalar_prefetch=0,
            grid=(2, n_tiles),                                      # (phase, batch tile)
            in_specs=[
                # x only needed in phase 0; pin block 0 during phase 1 (no re-DMA).
                pl.BlockSpec((tile_b, in_dim), lambda p, t: (t * (1 - p), 0)),
                pl.BlockSpec((in_dim, h1p), lambda p, t: (0, 0)),   # weights resident
                pl.BlockSpec((h1p, h2p), lambda p, t: (0, 0)),
                pl.BlockSpec((h2p, outp), lambda p, t: (0, 0)),
                pl.BlockSpec((8, vp), lambda p, t: (0, 0)),         # packed b1/gamma/beta/b2/b3
            ],
            # Stay on block 0 during the stats phase so nothing is written back
            # until the apply phase produces real data.
            out_specs=pl.BlockSpec((tile_b, outp), lambda p, t: (t * p, 0)),
            scratch_shapes=[
                pltpu.VMEM((B, h1p), jnp.float32),   # h1 for the whole batch
                pltpu.VMEM((1, h1p), jnp.float32),   # sum(h1)
                pltpu.VMEM((1, h1p), jnp.float32),   # sum(h1^2)
                pltpu.VMEM((2, h1p), jnp.float32),   # folded BN scale / shift
            ],
        ),
        compiler_params=pltpu.CompilerParams(
            dimension_semantics=("arbitrary", "arbitrary"),
            vmem_limit_bytes=_VMEM_LIMIT),
    )(x_bf, w1, w2, w3, vec)

    return out_p[:, :out_dim]


def init_params(key, in_dim, n_hidden_1, n_hidden_2, out_dim,
                weight_dtype=jnp.bfloat16):
    """Deterministic synthetic params matching Net(in_dim, h1, h2, out_dim).

    Output/lane dims padded to multiples of 128; the K axis of w1 stays unpadded
    (the x block uses the full array dim, avoiding any HBM pad/copy of x).
    Padded lanes of gamma/beta/biases are exactly zero so dead lanes stay zero
    through BN/ReLU and contribute nothing downstream (w2/w3 pad rows are zero).
    """
    h1p, h2p, outp = _round_up(n_hidden_1), _round_up(n_hidden_2), _round_up(out_dim)
    vp = max(h1p, h2p, outp)
    ks = jax.random.split(key, 6)

    def lin(kw, kb, fan_in, fan_out, fi_p, fo_p):
        bound = 1.0 / (fan_in ** 0.5)
        w = jax.random.uniform(kw, (fan_in, fan_out), jnp.float32, -bound, bound)
        b = jax.random.uniform(kb, (fan_out,), jnp.float32, -bound, bound)
        w_p = jnp.zeros((fi_p, fo_p), jnp.float32).at[:fan_in, :fan_out].set(w)
        b_p = jnp.zeros((vp,), jnp.float32).at[:fan_out].set(b)
        return w_p.astype(weight_dtype), b_p

    w1, b1 = lin(ks[0], ks[1], in_dim, n_hidden_1, in_dim, h1p)   # K axis unpadded
    w2, b2 = lin(ks[2], ks[3], n_hidden_1, n_hidden_2, h1p, h2p)
    w3, b3 = lin(ks[4], ks[5], n_hidden_2, out_dim, h2p, outp)

    # BatchNorm1d affine params (perturbed from gamma=1/beta=0 so the affine
    # path is exercised); padded lanes zero.
    g = 1.0 + 0.05 * jnp.arange(n_hidden_1, dtype=jnp.float32) / n_hidden_1
    bt = 0.01 * jnp.arange(n_hidden_1, dtype=jnp.float32) / n_hidden_1
    gamma = jnp.zeros((vp,), jnp.float32).at[:n_hidden_1].set(g)
    beta = jnp.zeros((vp,), jnp.float32).at[:n_hidden_1].set(bt)

    # Pack the five small vectors into one (8, vp) operand at init time:
    # rows = [b1, gamma, beta, b2, b3] -> one DMA, zero per-call packing ops.
    vec = jnp.zeros((8, vp), jnp.float32)
    vec = vec.at[0].set(b1).at[1].set(gamma).at[2].set(beta)
    vec = vec.at[3].set(b2).at[4].set(b3)

    return dict(w1=w1, w2=w2, w3=w3, vec=vec)


def net_reference(x, params, out_dim):
    """Pure-JAX reference with the same dtype handling (sanity check only)."""
    w1, w2, w3, vec = params["w1"], params["w2"], params["w3"], params["vec"]
    h1p, h2p, outp = w1.shape[1], w2.shape[1], w3.shape[1]
    b1, gamma, beta = vec[0:1, :h1p], vec[1:2, :h1p], vec[2:3, :h1p]
    b2, b3 = vec[3:4, :h2p], vec[4:5, :outp]

    h1 = jnp.dot(x.astype(jnp.bfloat16), w1, preferred_element_type=jnp.float32) + b1
    mean = jnp.mean(h1, axis=0, keepdims=True)
    var = jnp.maximum(jnp.mean(h1 * h1, axis=0, keepdims=True) - mean * mean, 0.0)
    a1 = jnp.maximum((h1 - mean) * (gamma * jax.lax.rsqrt(var + BN_EPS)) + beta, 0.0)
    h2 = jnp.dot(a1.astype(jnp.bfloat16), w2, preferred_element_type=jnp.float32) + b2
    a2 = jnp.maximum(h2, 0.0)
    out = jnp.dot(a2.astype(jnp.bfloat16), w3, preferred_element_type=jnp.float32) + b3
    return out[:, :out_dim]


if __name__ == "__main__":
    # Shapes consistent with Net(in_dim, n_hidden_1, n_hidden_2, out_dim); the
    # batch gives 2 grid tiles so the stats accumulation + h1 VMEM scratch
    # indexing across tiles is exercised.
    B, in_dim, n_hidden_1, n_hidden_2, out_dim = 1024, 32, 64, 32, 16

    key = jax.random.PRNGKey(0)
    kx, kp = jax.random.split(key)
    x = jax.random.normal(kx, (B, in_dim), dtype=jnp.float32)
    params = init_params(kp, in_dim, n_hidden_1, n_hidden_2, out_dim)

    fwd = jax.jit(net_forward, static_argnames=("out_dim", "block_rows"))
    out = fwd(x, params, out_dim=out_dim, block_rows=512)   # 2 batch tiles
    jax.block_until_ready(out)

    assert out.shape == (B, out_dim) and out.dtype == jnp.float32

    ref = net_reference(x, params, out_dim)
    max_err = float(jnp.max(jnp.abs(out - ref)))
    assert jnp.allclose(out, ref, rtol=5e-2, atol=5e-2), max_err

    print("KERNEL_OK")
</pallas_src>

<mosaic_0001>
module attributes {stable_mosaic.version = 11 : i64} {
  func.func @_fused_kernel(%arg0: i32, %arg1: i32, %arg2: memref<512x32xbf16, #tpu.memory_space<vmem>>, %arg3: memref<32x128xbf16, #tpu.memory_space<vmem>>, %arg4: memref<128x128xbf16, #tpu.memory_space<vmem>>, %arg5: memref<128x128xbf16, #tpu.memory_space<vmem>>, %arg6: memref<8x128xf32, #tpu.memory_space<vmem>>, %arg7: memref<512x128xf32, #tpu.memory_space<vmem>>, %arg8: memref<1024x128xf32, #tpu.memory_space<vmem>>, %arg9: memref<1x128xf32, #tpu.memory_space<vmem>>, %arg10: memref<1x128xf32, #tpu.memory_space<vmem>>, %arg11: memref<2x128xf32, #tpu.memory_space<vmem>>) attributes {dimension_semantics = [#tpu.dimension_semantics<arbitrary>, #tpu.dimension_semantics<arbitrary>], iteration_bounds = array<i64: 2, 2>, scalar_prefetch = 0 : i64, scratch_operands = 4 : i64, tpu.core_type = #tpu.core_type<tc>, window_params = [{transform_indices = @transform_0, window_bounds = array<i64: 512, 32>}, {pipeline_mode = #tpu.pipeline_mode<synchronous>, transform_indices = @transform_1, window_bounds = array<i64: 32, 128>}, {pipeline_mode = #tpu.pipeline_mode<synchronous>, transform_indices = @transform_2, window_bounds = array<i64: 128, 128>}, {pipeline_mode = #tpu.pipeline_mode<synchronous>, transform_indices = @transform_3, window_bounds = array<i64: 128, 128>}, {pipeline_mode = #tpu.pipeline_mode<synchronous>, transform_indices = @transform_4, window_bounds = array<i64: 8, 128>}, {transform_indices = @transform_5, window_bounds = array<i64: 512, 128>}]} {
    %c512_i32 = arith.constant 512 : i32
    %0 = arith.muli %arg1, %c512_i32 : i32
    %1 = tpu.assume_multiple %0, 512 : i32
    %c0_i32 = arith.constant 0 : i32
    %2 = arith.cmpi eq, %arg0, %c0_i32 : i32
    %3 = arith.extui %2 : i1 to i32
    %c0_i32_0 = arith.constant 0 : i32
    %4 = arith.cmpi ne, %3, %c0_i32_0 : i32
    scf.if %4 {
      %c0_i32_2 = arith.constant 0 : i32
      %8 = arith.cmpi eq, %arg1, %c0_i32_2 : i32
      %9 = arith.extui %8 : i1 to i32
      %c0_i32_3 = arith.constant 0 : i32
      %10 = arith.cmpi ne, %9, %c0_i32_3 : i32
      scf.if %10 {
        %cst_20 = arith.constant 0.000000e+00 : f32
        %30 = vector.broadcast %cst_20 : f32 to vector<1x128xf32>
        %c0_21 = arith.constant 0 : index
        %c0_22 = arith.constant 0 : index
        %31 = vector.load %arg9[%c0_21, %c0_22] : memref<1x128xf32, #tpu.memory_space<vmem>>, vector<1x128xf32>
        tpu.vector_store %arg9[%c0_21, %c0_22], %30 {strides = array<i32>} : memref<1x128xf32, #tpu.memory_space<vmem>>, vector<1x128xf32>,
        %cst_23 = arith.constant 0.000000e+00 : f32
        %32 = vector.broadcast %cst_23 : f32 to vector<1x128xf32>
        %c0_24 = arith.constant 0 : index
        %c0_25 = arith.constant 0 : index
        %33 = vector.load %arg10[%c0_24, %c0_25] : memref<1x128xf32, #tpu.memory_space<vmem>>, vector<1x128xf32>
        tpu.vector_store %arg10[%c0_24, %c0_25], %32 {strides = array<i32>} : memref<1x128xf32, #tpu.memory_space<vmem>>, vector<1x128xf32>,
      } else {
      }
      %c0 = arith.constant 0 : index
      %c0_4 = arith.constant 0 : index
      %11 = vector.load %arg2[%c0, %c0_4] : memref<512x32xbf16, #tpu.memory_space<vmem>>, vector<512x32xbf16>
      %c0_5 = arith.constant 0 : index
      %c0_6 = arith.constant 0 : index
      %12 = vector.load %arg3[%c0_5, %c0_6] : memref<32x128xbf16, #tpu.memory_space<vmem>>, vector<32x128xbf16>
      %cst = arith.constant dense<0.000000e+00> : vector<512x128xf32>
      %13 = tpu.matmul %11, %12, %cst {dimension_numbers = #tpu.dot_dimension_numbers<[1], [0], [0], [1], [0, 0, 1, 1], [], []>} : vector<512x32xbf16>, vector<32x128xbf16>, vector<512x128xf32> -> vector<512x128xf32>
      %c0_7 = arith.constant 0 : index
      %c0_8 = arith.constant 0 : index
      %14 = vector.load %arg6[%c0_7, %c0_8] : memref<8x128xf32, #tpu.memory_space<vmem>>, vector<1x128xf32>
      %15 = vector.broadcast %14 : vector<1x128xf32> to vector<512x128xf32>
      %16 = arith.addf %13, %15 : vector<512x128xf32>
      %17 = arith.index_cast %1 : i32 to index
      %c0_9 = arith.constant 0 : index
      %18 = vector.load %arg8[%17, %c0_9] : memref<1024x128xf32, #tpu.memory_space<vmem>>, vector<512x128xf32>
      tpu.vector_store %arg8[%17, %c0_9], %16 {strides = array<i32>} : memref<1024x128xf32, #tpu.memory_space<vmem>>, vector<512x128xf32>,
      %c0_10 = arith.constant 0 : index
      %c0_11 = arith.constant 0 : index
      %19 = vector.load %arg9[%c0_10, %c0_11] : memref<1x128xf32, #tpu.memory_space<vmem>>, vector<1x128xf32>
      %cst_12 = arith.constant dense<0.000000e+00> : vector<128xf32>
      %20 = vector.multi_reduction <add>, %16, %cst_12 [0] : vector<512x128xf32> to vector<128xf32>
      %21 = vector.shape_cast %20 : vector<128xf32> to vector<1x128xf32>
      %22 = arith.addf %19, %21 : vector<1x128xf32>
      %c0_13 = arith.constant 0 : index
      %c0_14 = arith.constant 0 : index
      %23 = vector.load %arg9[%c0_13, %c0_14] : memref<1x128xf32, #tpu.memory_space<vmem>>, vector<1x128xf32>
      tpu.vector_store %arg9[%c0_13, %c0_14], %22 {strides = array<i32>} : memref<1x128xf32, #tpu.memory_space<vmem>>, vector<1x128xf32>,
      %c0_15 = arith.constant 0 : index
      %c0_16 = arith.constant 0 : index
      %24 = vector.load %arg10[%c0_15, %c0_16] : memref<1x128xf32, #tpu.memory_space<vmem>>, vector<1x128xf32>
      %25 = arith.mulf %16, %16 : vector<512x128xf32>
      %cst_17 = arith.constant dense<0.000000e+00> : vector<128xf32>
      %26 = vector.multi_reduction <add>, %25, %cst_17 [0] : vector<512x128xf32> to vector<128xf32>
      %27 = vector.shape_cast %26 : vector<128xf32> to vector<1x128xf32>
      %28 = arith.addf %24, %27 : vector<1x128xf32>
      %c0_18 = arith.constant 0 : index
      %c0_19 = arith.constant 0 : index
      %29 = vector.load %arg10[%c0_18, %c0_19] : memref<1x128xf32, #tpu.memory_space<vmem>>, vector<1x128xf32>
      tpu.vector_store %arg10[%c0_18, %c0_19], %28 {strides = array<i32>} : memref<1x128xf32, #tpu.memory_space<vmem>>, vector<1x128xf32>,
    } else {
    }
    %c1_i32 = arith.constant 1 : i32
    %5 = arith.cmpi eq, %arg0, %c1_i32 : i32
    %6 = arith.extui %5 : i1 to i32
    %c0_i32_1 = arith.constant 0 : i32
    %7 = arith.cmpi ne, %6, %c0_i32_1 : i32
    scf.if %7 {
      %c0_i32_2 = arith.constant 0 : i32
      %8 = arith.cmpi eq, %arg1, %c0_i32_2 : i32
      %9 = arith.extui %8 : i1 to i32
      %c0_i32_3 = arith.constant 0 : i32
      %10 = arith.cmpi ne, %9, %c0_i32_3 : i32
      scf.if %10 {
        %c0_18 = arith.constant 0 : index
        %c0_19 = arith.constant 0 : index
        %36 = vector.load %arg9[%c0_18, %c0_19] : memref<1x128xf32, #tpu.memory_space<vmem>>, vector<1x128xf32>
        %cst_20 = arith.constant 9.765625E-4 : f32
        %37 = vector.broadcast %cst_20 : f32 to vector<1x128xf32>
        %38 = arith.mulf %36, %37 : vector<1x128xf32>
        %c0_21 = arith.constant 0 : index
        %c0_22 = arith.constant 0 : index
        %39 = vector.load %arg10[%c0_21, %c0_22] : memref<1x128xf32, #tpu.memory_space<vmem>>, vector<1x128xf32>
        %cst_23 = arith.constant 9.765625E-4 : f32
        %40 = vector.broadcast %cst_23 : f32 to vector<1x128xf32>
        %41 = arith.mulf %39, %40 : vector<1x128xf32>
        %42 = arith.mulf %38, %38 : vector<1x128xf32>
        %43 = arith.subf %41, %42 : vector<1x128xf32>
        %cst_24 = arith.constant 0.000000e+00 : f32
        %44 = vector.broadcast %cst_24 : f32 to vector<1x128xf32>
        %45 = arith.maximumf %43, %44 : vector<1x128xf32>
        %c1_25 = arith.constant 1 : index
        %c0_26 = arith.constant 0 : index
        %46 = vector.load %arg6[%c1_25, %c0_26] : memref<8x128xf32, #tpu.memory_space<vmem>>, vector<1x128xf32>
        %cst_27 = arith.constant 9.99999974E-6 : f32
        %47 = vector.broadcast %cst_27 : f32 to vector<1x128xf32>
        %48 = arith.addf %45, %47 : vector<1x128xf32>
        %49 = math.rsqrt %48 : vector<1x128xf32>
        %50 = arith.mulf %46, %49 : vector<1x128xf32>
        %c2 = arith.constant 2 : index
        %c0_28 = arith.constant 0 : index
        %51 = vector.load %arg6[%c2, %c0_28] : memref<8x128xf32, #tpu.memory_space<vmem>>, vector<1x128xf32>
        %52 = arith.mulf %38, %50 : vector<1x128xf32>
        %53 = arith.subf %51, %52 : vector<1x128xf32>
        %c0_29 = arith.constant 0 : index
        %c0_30 = arith.constant 0 : index
        %54 = vector.load %arg11[%c0_29, %c0_30] : memref<2x128xf32, #tpu.memory_space<vmem>>, vector<1x128xf32>
        tpu.vector_store %arg11[%c0_29, %c0_30], %50 {strides = array<i32>} : memref<2x128xf32, #tpu.memory_space<vmem>>, vector<1x128xf32>,
        %c1_31 = arith.constant 1 : index
        %c0_32 = arith.constant 0 : index
        %55 = vector.load %arg11[%c1_31, %c0_32] : memref<2x128xf32, #tpu.memory_space<vmem>>, vector<1x128xf32>
        tpu.vector_store %arg11[%c1_31, %c0_32], %53 {strides = array<i32>} : memref<2x128xf32, #tpu.memory_space<vmem>>, vector<1x128xf32>,
      } else {
      }
      %11 = arith.index_cast %1 : i32 to index
      %c0 = arith.constant 0 : index
      %12 = vector.load %arg8[%11, %c0] : memref<1024x128xf32, #tpu.memory_space<vmem>>, vector<512x128xf32>
      %c0_4 = arith.constant 0 : index
      %c0_5 = arith.constant 0 : index
      %13 = vector.load %arg11[%c0_4, %c0_5] : memref<2x128xf32, #tpu.memory_space<vmem>>, vector<1x128xf32>
      %14 = vector.broadcast %13 : vector<1x128xf32> to vector<512x128xf32>
      %15 = arith.mulf %12, %14 : vector<512x128xf32>
      %c1 = arith.constant 1 : index
      %c0_6 = arith.constant 0 : index
      %16 = vector.load %arg11[%c1, %c0_6] : memref<2x128xf32, #tpu.memory_space<vmem>>, vector<1x128xf32>
      %17 = vector.broadcast %16 : vector<1x128xf32> to vector<512x128xf32>
      %18 = arith.addf %15, %17 : vector<512x128xf32>
      %cst = arith.constant 0.000000e+00 : f32
      %19 = vector.broadcast %cst : f32 to vector<512x128xf32>
      %20 = arith.maximumf %18, %19 : vector<512x128xf32>
      %21 = arith.truncf %20 : vector<512x128xf32> to vector<512x128xbf16>
      %c0_7 = arith.constant 0 : index
      %c0_8 = arith.constant 0 : index
      %22 = vector.load %arg4[%c0_7, %c0_8] : memref<128x128xbf16, #tpu.memory_space<vmem>>, vector<128x128xbf16>
      %cst_9 = arith.constant dense<0.000000e+00> : vector<512x128xf32>
      %23 = tpu.matmul %21, %22, %cst_9 {dimension_numbers = #tpu.dot_dimension_numbers<[1], [0], [0], [1], [0, 0, 1, 1], [], []>} : vector<512x128xbf16>, vector<128x128xbf16>, vector<512x128xf32> -> vector<512x128xf32>
      %c3 = arith.constant 3 : index
      %c0_10 = arith.constant 0 : index
      %24 = vector.load %arg6[%c3, %c0_10] : memref<8x128xf32, #tpu.memory_space<vmem>>, vector<1x128xf32>
      %25 = vector.broadcast %24 : vector<1x128xf32> to vector<512x128xf32>
      %26 = arith.addf %23, %25 : vector<512x128xf32>
      %cst_11 = arith.constant 0.000000e+00 : f32
      %27 = vector.broadcast %cst_11 : f32 to vector<512x128xf32>
      %28 = arith.maximumf %26, %27 : vector<512x128xf32>
      %29 = arith.truncf %28 : vector<512x128xf32> to vector<512x128xbf16>
      %c0_12 = arith.constant 0 : index
      %c0_13 = arith.constant 0 : index
      %30 = vector.load %arg5[%c0_12, %c0_13] : memref<128x128xbf16, #tpu.memory_space<vmem>>, vector<128x128xbf16>
      %cst_14 = arith.constant dense<0.000000e+00> : vector<512x128xf32>
      %31 = tpu.matmul %29, %30, %cst_14 {dimension_numbers = #tpu.dot_dimension_numbers<[1], [0], [0], [1], [0, 0, 1, 1], [], []>} : vector<512x128xbf16>, vector<128x128xbf16>, vector<512x128xf32> -> vector<512x128xf32>
      %c4 = arith.constant 4 : index
      %c0_15 = arith.constant 0 : index
      %32 = vector.load %arg6[%c4, %c0_15] : memref<8x128xf32, #tpu.memory_space<vmem>>, vector<1x128xf32>
      %33 = vector.broadcast %32 : vector<1x128xf32> to vector<512x128xf32>
      %34 = arith.addf %31, %33 : vector<512x128xf32>
      %c0_16 = arith.constant 0 : index
      %c0_17 = arith.constant 0 : index
      %35 = vector.load %arg7[%c0_16, %c0_17] : memref<512x128xf32, #tpu.memory_space<vmem>>, vector<512x128xf32>
      tpu.vector_store %arg7[%c0_16, %c0_17], %34 {strides = array<i32>} : memref<512x128xf32, #tpu.memory_space<vmem>>, vector<512x128xf32>,
    } else {
    }
    return
  }
  func.func @transform_0(%arg0: i32, %arg1: i32) -> (i32, i32) {
    %c1_i32 = arith.constant 1 : i32
    %0 = arith.subi %c1_i32, %arg0 : i32
    %1 = arith.muli %arg1, %0 : i32
    %c0_i32 = arith.constant 0 : i32
    %c0_i32_0 = arith.constant 0 : i32
    return %1, %c0_i32 : i32, i32
  }
  func.func @transform_1(%arg0: i32, %arg1: i32) -> (i32, i32) {
    %c0_i32 = arith.constant 0 : i32
    %c0_i32_0 = arith.constant 0 : i32
    %c0_i32_1 = arith.constant 0 : i32
    return %c0_i32, %c0_i32_0 : i32, i32
  }
  func.func @transform_2(%arg0: i32, %arg1: i32) -> (i32, i32) {
    %c0_i32 = arith.constant 0 : i32
    %c0_i32_0 = arith.constant 0 : i32
    %c0_i32_1 = arith.constant 0 : i32
    return %c0_i32, %c0_i32_0 : i32, i32
  }
  func.func @transform_3(%arg0: i32, %arg1: i32) -> (i32, i32) {
    %c0_i32 = arith.constant 0 : i32
    %c0_i32_0 = arith.constant 0 : i32
    %c0_i32_1 = arith.constant 0 : i32
    return %c0_i32, %c0_i32_0 : i32, i32
  }
  func.func @transform_4(%arg0: i32, %arg1: i32) -> (i32, i32) {
    %c0_i32 = arith.constant 0 : i32
    %c0_i32_0 = arith.constant 0 : i32
    %c0_i32_1 = arith.constant 0 : i32
    return %c0_i32, %c0_i32_0 : i32, i32
  }
  func.func @transform_5(%arg0: i32, %arg1: i32) -> (i32, i32) {
    %0 = arith.muli %arg1, %arg0 : i32
    %c0_i32 = arith.constant 0 : i32
    %c0_i32_0 = arith.constant 0 : i32
    return %0, %c0_i32 : i32, i32
  }
}

</mosaic_0001>

<bundles_post_ra>
// kernel: net_forward.1
= control target key start
LH: loop header
LB: loop body
LE: loop exit
PB: predicated region body
PF: predicated region fallthrough
CT: control target
= control target key end

     0   :  { %s2522_s18 = smov 0   ;;  %s2524_s19 = smov 0   ;;  %s3577_s0 = inlined_call_operand.vmem [shape: bf16[1024,32], index: 0, kind: input, shape index: {}]   ;;  %s3578_s1 = inlined_call_operand.vmem [shape: bf16[32,128], index: 1, kind: input, shape index: {}]   ;;  %s3579_s2 = inlined_call_operand.vmem [shape: bf16[128,128], index: 2, kind: input, shape index: {}]   ;;  %s3580_s3 = inlined_call_operand.vmem [shape: bf16[128,128], index: 3, kind: input, shape index: {}]   ;;  %s3581_s4 = inlined_call_operand.vmem [shape: f32[8,128], index: 4, kind: input, shape index: {}]   ;;  %s3582_s5 = inlined_call_operand.vmem [shape: f32[1024,128], index: 5, kind: output, shape index: {}]  }
   0x1   :  { %s2526_s20 = smov 0   ;;  %s2528_s21 = smov 0  }
   0x2   :  { %s2530_s22 = smov 0  }
   0x3 LB: > { %s24_s23 = sadd.s32 1, %s2481_s20  ;;  %s27_s24 = sadd.s32 1, %s2485_s21  ;;  %s2489_s22 = sphi %s2530_s22, %s15_s22   ;;  %s2485_s21 = sphi %s2528_s21, %s3586_s21   ;;  %s2481_s20 = sphi %s2526_s20, %s3585_s20   ;;  %s2477_s19 = sphi %s2524_s19, %s3584_s19   ;;  %s2473_s18 = sphi %s2522_s18, %s3583_s18  }
   0x4   : > { %p25_p0 = scmp.ge.s32.totalorder %s24_s23, 2  ;;  %p2087_p1 = scmp.ge.s32.totalorder %s2489_s22, 1 }
   0x5   : > { %p210_p2 = scmp.lt.s32.totalorder %s2489_s22, 5 }
   0x6   : > { %s3588_s23 = smov (%p25_p0, %s24_s23), 0  ;;  %s3590_s24 = smov (!%p25_p0, %s27_s24), %s2485_s21 }
   0x7   : > { %p211_p3 = pnand %p2087_p1, %p210_p2  ;;  %p29_p4 = scmp.ge.s32.totalorder %s3590_s24, 2 }
   0x8   : > { %s241_s25 = ssub.s32 (!%p211_p3), 1, %s2477_s19  ;;  %s251_s26 = smul.u32 (!%p211_p3), %s2473_s18, %s2477_s19 }
   0x9   : > { %s3592_s24 = smov (%p29_p4, %s3590_s24), 0  ;;  %214 = sbr.rel (%p211_p3) target bundleno = 1007 (0x3ef), region = 40 }
   0xa   : > { %s242_s27 = smul.u32 (!%p211_p3), %s2473_s18, %s241_s25  ;;  %s2092_s28 = sshll.u32 (!%p211_p3), %s2473_s18, 9 }
   0xb   : > { %s2090_s29 = sshll.u32 (!%p211_p3), %s251_s26, 6  ;;  %p2093_p7 = scmp.ne.s32.totalorder (!%p211_p3), %s2477_s19, 0 }
   0xc   : > { %s2088_s30 = sshll.u32 (!%p211_p3), %s242_s27, 6  ;;  %p253_p5 = scmp.lt.s32.totalorder (!%p211_p3), %s2090_s29, 127 }
   0xd   : > { %p244_p6 = scmp.lt.s32.totalorder (!%p211_p3), %s2088_s30, 127 }
   0xe   : > { %s3594_s29 = smov (!%p253_p5, %s2090_s29), 127  ;;  %264 = sbr.rel (%p2093_p7) target bundleno = 398 (0x18e), region = 44 }
   0xf   : > { %s3596_s30 = smov (!%p244_p6, %s2088_s30), 127  ;;  %s2091_s6 = sshll.u32 %s3594_s29, 3 }
  0x10   : > { %s2089_s7 = sshll.u32 %s3596_s30, 2  ;;  %s2564_s10 = scalar_lea.vmem %s3582_s5, %s2091_s6 }
  0x11   : > { %s2569_s13 = scalar_lea.vmem %s3577_s0, %s2089_s7  ;;  %p2094_p8 = scmp.ne.s32.totalorder (!%p2093_p7), %s2473_s18, 0 }
  0x13   : > { %268 = sbr.rel (%p2094_p8) target bundleno = 27 (0x1b), region = 48 }
  0x18   : > { %v2491_v0 = vmov 0.0  }
  0x19   : > { %269 = vst [vmem:[#allocation3] sm:$0x1] %v2491_v0 }
  0x1a   : > { %270 = vst [vmem:[#allocation4] sm:$0x1] %v2491_v0 }
  0x1b PF: > { %v2364_v1 = vld [vmem:[%s3578_s1 + $0x8] sm:$0xff]  ;;  %v2363_v2 = vld [vmem:[%s3578_s1] sm:$0xff]  ;;  %vm513_vm0 = vcmask 261120   ;;  %v2333_v8 = vld [vmem:[%s2569_s13 + $0x10] sm:$0xff]  ;;  %s2646_s27 = scalar_lea.vmem [#allocation2], %s2092_s28 }
  0x1c   : > { %616 = vmatpush.bf16.msra.mxu0 %v2364_v1  ;;  %2381 = vmatpush.bf16.msra.mxu1 %v2364_v1  ;;  %v2331_v3 = vld [vmem:[%s2569_s13] sm:$0xff]  ;;  %v2332_v5 = vld [vmem:[%s2569_s13 + $0x8] sm:$0xff]  ;;  %v2341_v9 = vld [vmem:[%s2569_s13 + $0x50] sm:$0xff] }
  0x1d   : > { %2382 = vmatpush.bf16.msra.mxu2 %v2364_v1  ;;  %2383 = vmatpush.bf16.msra.mxu3 %v2364_v1  ;;  %v2339_v4 = vld [vmem:[%s2569_s13 + $0x40] sm:$0xff]  ;;  %v2340_v6 = vld [vmem:[%s2569_s13 + $0x48] sm:$0xff]  ;;  %v2334_v11 = vld [vmem:[%s2569_s13 + $0x18] sm:$0xff] }
  0x1e   : > { %v2347_v7 = vld [vmem:[%s2569_s13 + $0x80] sm:$0xff]  ;;  %v2348_v10 = vld [vmem:[%s2569_s13 + $0x88] sm:$0xff]  ;;  %v2342_v12 = vld [vmem:[%s2569_s13 + $0x58] sm:$0xff] }
  0x1f   : > { %v2349_v13 = vld [vmem:[%s2569_s13 + $0x90] sm:$0xff]  ;;  %v2355_v14 = vld [vmem:[%s2569_s13 + $0xc0] sm:$0xff]  ;;  %v2350_v17 = vld [vmem:[%s2569_s13 + $0x98] sm:$0xff] }
  0x20   : > { %617 = vmatpush.bf16.msra.mxu0 %v2363_v2  ;;  %2384 = vmatpush.bf16.msra.mxu1 %v2363_v2  ;;  %v2335_v15 = vld [vmem:[%s2569_s13 + $0x20] sm:$0xff]  ;;  %v2356_v18 = vld [vmem:[%s2569_s13 + $0xc8] sm:$0xff]  ;;  %v2357_v22 = vld [vmem:[%s2569_s13 + $0xd0] sm:$0xff] }
  0x21   : > { %2385 = vmatpush.bf16.msra.mxu2 %v2363_v2  ;;  %2386 = vmatpush.bf16.msra.mxu3 %v2363_v2  ;;  %v2343_v16 = vld [vmem:[%s2569_s13 + $0x60] sm:$0xff]  ;;  %v2336_v19 = vld [vmem:[%s2569_s13 + $0x28] sm:$0xff]  ;;  %v2337_v23 = vld [vmem:[%s2569_s13 + $0x30] sm:$0xff] }
  0x22   : > { %v2344_v20 = vld [vmem:[%s2569_s13 + $0x68] sm:$0xff]  ;;  %v2351_v21 = vld [vmem:[%s2569_s13 + $0xa0] sm:$0xff]  ;;  %v2345_v24 = vld [vmem:[%s2569_s13 + $0x70] sm:$0xff] }
  0x23   : > { %2231 = vmatmul.msk.bf16.vlgmr.msra.gmra.mxu0 %vm513_vm0, %v2331_v3  ;;  %2239 = vmatmul.msk.bf16.vlgmr.msra.gmra.mxu1 %vm513_vm0, %v2339_v4  ;;  %v2352_v25 = vld [vmem:[%s2569_s13 + $0xa8] sm:$0xff]  ;;  %v2358_v26 = vld [vmem:[%s2569_s13 + $0xd8] sm:$0xff]  ;;  %v2353_v29 = vld [vmem:[%s2569_s13 + $0xb0] sm:$0xff] }
  0x24   : > { %2247 = vmatmul.msk.bf16.vlgmr.msra.gmra.mxu2 %vm513_vm0, %v2347_v7  ;;  %2255 = vmatmul.msk.bf16.vlgmr.msra.gmra.mxu3 %vm513_vm0, %v2355_v14  ;;  %v2338_v27 = vld [vmem:[%s2569_s13 + $0x38] sm:$0xff]  ;;  %v2359_v30 = vld [vmem:[%s2569_s13 + $0xe0] sm:$0xff]  ;;  %v2360_v37 = vld [vmem:[%s2569_s13 + $0xe8] sm:$0xff] }
  0x25   : > { %v2346_v28 = vld [vmem:[%s2569_s13 + $0x78] sm:$0xff]  ;;  %v2638_v31 = vld [vmem:[%s3581_s4] ss:$0 sm:$0xff]  ;;  %v2361_v52 = vld [vmem:[%s2569_s13 + $0xf0] sm:$0xff] }
  0x26   : > { %v2354_v36 = vld [vmem:[%s2569_s13 + $0xb8] sm:$0xff] }
  0x27   : > { %v2362_v7 = vld [vmem:[%s2569_s13 + $0xf8] sm:$0xff] }
  0x33   : > { %2232 = vmatmul.msk.bf16.gmra.mxu0 %vm513_vm0, %v2332_v5  ;;  %2240 = vmatmul.msk.bf16.gmra.mxu1 %vm513_vm0, %v2340_v6 }
  0x34   : > { %2248 = vmatmul.msk.bf16.gmra.mxu2 %vm513_vm0, %v2348_v10  ;;  %2256 = vmatmul.msk.bf16.gmra.mxu3 %vm513_vm0, %v2356_v18 }
  0x43   : > { %2233 = vmatmul.msk.bf16.gmra.mxu0 %vm513_vm0, %v2333_v8  ;;  %2241 = vmatmul.msk.bf16.gmra.mxu1 %vm513_vm0, %v2341_v9 }
  0x44   : > { %2249 = vmatmul.msk.bf16.gmra.mxu2 %vm513_vm0, %v2349_v13  ;;  %2257 = vmatmul.msk.bf16.gmra.mxu3 %vm513_vm0, %v2357_v22 }
  0x53   : > { %2234 = vmatmul.msk.bf16.gmra.mxu0 %vm513_vm0, %v2334_v11  ;;  %2242 = vmatmul.msk.bf16.gmra.mxu1 %vm513_vm0, %v2342_v12 }
  0x54   : > { %2250 = vmatmul.msk.bf16.gmra.mxu2 %vm513_vm0, %v2350_v17  ;;  %2258 = vmatmul.msk.bf16.gmra.mxu3 %vm513_vm0, %v2358_v26 }
  0x63   : > { %2235 = vmatmul.msk.bf16.gmra.mxu0 %vm513_vm0, %v2335_v15  ;;  %2243 = vmatmul.msk.bf16.gmra.mxu1 %vm513_vm0, %v2343_v16 }
  0x64   : > { %2251 = vmatmul.msk.bf16.gmra.mxu2 %vm513_vm0, %v2351_v21  ;;  %2259 = vmatmul.msk.bf16.gmra.mxu3 %vm513_vm0, %v2359_v30 }
  0x73   : > { %2236 = vmatmul.msk.bf16.gmra.mxu0 %vm513_vm0, %v2336_v19  ;;  %2244 = vmatmul.msk.bf16.gmra.mxu1 %vm513_vm0, %v2344_v20 }
  0x74   : > { %2252 = vmatmul.msk.bf16.gmra.mxu2 %vm513_vm0, %v2352_v25  ;;  %2260 = vmatmul.msk.bf16.gmra.mxu3 %vm513_vm0, %v2360_v37 }
  0x83   : > { %2237 = vmatmul.msk.bf16.gmra.mxu0 %vm513_vm0, %v2337_v23  ;;  %2245 = vmatmul.msk.bf16.gmra.mxu1 %vm513_vm0, %v2345_v24 }
  0x84   : > { %2253 = vmatmul.msk.bf16.gmra.mxu2 %vm513_vm0, %v2353_v29  ;;  %2261 = vmatmul.msk.bf16.gmra.mxu3 %vm513_vm0, %v2361_v52 }
  0x93   : > { %2238 = vmatmul.msk.bf16.gmra.mxu0 %vm513_vm0, %v2338_v27  ;;  %2246 = vmatmul.msk.bf16.gmra.mxu1 %vm513_vm0, %v2346_v28 }
  0x94   : > { %2254 = vmatmul.msk.bf16.gmra.mxu2 %vm513_vm0, %v2354_v36  ;;  %2262 = vmatmul.msk.bf16.gmra.mxu3 %vm513_vm0, %v2362_v7 }
  0xa0   : > { %v619_v32 = vpop.f32.mrf.mxu0  ;;  %v659_v33 = vpop.f32.mrf.mxu1 }
  0xa1   : > { %v620_v34 = vadd.f32 %v2638_v31, %v619_v32  ;;  %v2642_v35 = vadd.f32 %v2638_v31, %v659_v33 }
  0xa3   : > { %780 = vst [vmem:[%s2646_s27] sm:$0xff] %v620_v34  ;;  %v917_v42 = vmul.f32 %v620_v34, %v620_v34 }
  0xa4   : > { %796 = vst [vmem:[%s2646_s27 + $0x80] sm:$0xff] %v2642_v35 }
  0xa7   : > { %v699_v58 = vpop.f32.mrf.mxu2  ;;  %v739_v26 = vpop.f32.mrf.mxu3 }
  0xa8   : > { %v621_v38 = vpop.f32.mrf.mxu0  ;;  %v661_v39 = vpop.f32.mrf.mxu1  ;;  %v2679_v62 = vadd.f32 %v2638_v31, %v699_v58  ;;  %v2745_v28 = vadd.f32 %v2638_v31, %v739_v26 }
  0xa9   : > { %v622_v40 = vadd.f32 %v2638_v31, %v621_v38  ;;  %v2657_v41 = vadd.f32 %v2638_v31, %v661_v39 }
  0xaa   : > { %812 = vst [vmem:[%s2646_s27 + $0x100] sm:$0xff] %v2679_v62 }
  0xab   : > { %781 = vst [vmem:[%s2646_s27 + $0x8] sm:$0xff] %v622_v40  ;;  %v845_v43 = vadd.f32 %v622_v40, %v620_v34  ;;  %v918_v44 = vmul.f32 %v622_v40, %v622_v40 }
  0xac   : > { %797 = vst [vmem:[%s2646_s27 + $0x88] sm:$0xff] %v2657_v41 }
  0xad   : > { %v981_v45 = vadd.f32 %v918_v44, %v917_v42  ;;  %828 = vst [vmem:[%s2646_s27 + $0x180] sm:$0xff] %v2745_v28 }
  0xaf   : > { %v701_v3 = vpop.f32.mrf.mxu2  ;;  %v741_v36 = vpop.f32.mrf.mxu3 }
  0xb0   : > { %v624_v46 = vpop.f32.mrf.mxu0  ;;  %v664_v47 = vpop.f32.mrf.mxu1  ;;  %v2688_v4 = vadd.f32 %v2638_v31, %v701_v3  ;;  %v2761_v38 = vadd.f32 %v2638_v31, %v741_v36 }
  0xb1   : > { %v625_v48 = vadd.f32 %v2638_v31, %v624_v46  ;;  %v2664_v49 = vadd.f32 %v2638_v31, %v664_v47 }
  0xb2   : > { %813 = vst [vmem:[%s2646_s27 + $0x108] sm:$0xff] %v2688_v4 }
  0xb3   : > { %782 = vst [vmem:[%s2646_s27 + $0x10] sm:$0xff] %v625_v48  ;;  %v846_v50 = vadd.f32 %v845_v43, %v625_v48  ;;  %v919_v51 = vmul.f32 %v625_v48, %v625_v48 }
  0xb4   : > { %798 = vst [vmem:[%s2646_s27 + $0x90] sm:$0xff] %v2664_v49 }
  0xb5   : > { %v982_v53 = vadd.f32 %v981_v45, %v919_v51  ;;  %829 = vst [vmem:[%s2646_s27 + $0x188] sm:$0xff] %v2761_v38 }
  0xb7   : > { %v704_v13 = vpop.f32.mrf.mxu2  ;;  %v744_v45 = vpop.f32.mrf.mxu3 }
  0xb8   : > { %v626_v54 = vpop.f32.mrf.mxu0  ;;  %v666_v55 = vpop.f32.mrf.mxu1  ;;  %v2712_v14 = vadd.f32 %v2638_v31, %v704_v13  ;;  %v2785_v47 = vadd.f32 %v2638_v31, %v744_v45 }
  0xb9   : > { %v627_v56 = vadd.f32 %v2638_v31, %v626_v54  ;;  %v2673_v57 = vadd.f32 %v2638_v31, %v666_v55 }
  0xba   : > { %814 = vst [vmem:[%s2646_s27 + $0x110] sm:$0xff] %v2712_v14 }
  0xbb   : > { %783 = vst [vmem:[%s2646_s27 + $0x18] sm:$0xff] %v627_v56  ;;  %v847_v59 = vadd.f32 %v846_v50, %v627_v56  ;;  %v920_v60 = vmul.f32 %v627_v56, %v627_v56 }
  0xbc   : > { %799 = vst [vmem:[%s2646_s27 + $0x98] sm:$0xff] %v2673_v57 }
  0xbd   : > { %v983_v61 = vadd.f32 %v982_v53, %v920_v60  ;;  %830 = vst [vmem:[%s2646_s27 + $0x190] sm:$0xff] %v2785_v47 }
  0xbf   : > { %v706_v19 = vpop.f32.mrf.mxu2  ;;  %v746_v54 = vpop.f32.mrf.mxu3 }
  0xc0   : > { %v629_v63 = vpop.f32.mrf.mxu0  ;;  %v669_v0 = vpop.f32.mrf.mxu1  ;;  %v2723_v20 = vadd.f32 %v2638_v31, %v706_v19  ;;  %v2799_v56 = vadd.f32 %v2638_v31, %v746_v54 }
  0xc1   : > { %v630_v1 = vadd.f32 %v2638_v31, %v629_v63  ;;  %v2685_v2 = vadd.f32 %v2638_v31, %v669_v0 }
  0xc2   : > { %815 = vst [vmem:[%s2646_s27 + $0x118] sm:$0xff] %v2723_v20 }
  0xc3   : > { %784 = vst [vmem:[%s2646_s27 + $0x20] sm:$0xff] %v630_v1  ;;  %v2691_v5 = vadd.f32 %v847_v59, %v630_v1  ;;  %v921_v6 = vmul.f32 %v630_v1, %v630_v1 }
  0xc4   : > { %800 = vst [vmem:[%s2646_s27 + $0xa0] sm:$0xff] %v2685_v2 }
  0xc5   : > { %v2696_v8 = vadd.f32 %v983_v61, %v921_v6  ;;  %831 = vst [vmem:[%s2646_s27 + $0x198] sm:$0xff] %v2799_v56 }
  0xc7   : > { %v709_v25 = vpop.f32.mrf.mxu2  ;;  %v749_v0 = vpop.f32.mrf.mxu3 }
  0xc8   : > { %v631_v9 = vpop.f32.mrf.mxu0  ;;  %v671_v10 = vpop.f32.mrf.mxu1  ;;  %v2742_v27 = vadd.f32 %v2638_v31, %v709_v25 }
  0xc9   : > { %v2702_v11 = vadd.f32 %v2638_v31, %v631_v9  ;;  %v2705_v12 = vadd.f32 %v2638_v31, %v671_v10 }
  0xca   : > { %816 = vst [vmem:[%s2646_s27 + $0x120] sm:$0xff] %v2742_v27 }
  0xcb   : > { %785 = vst [vmem:[%s2646_s27 + $0x28] sm:$0xff] %v2702_v11  ;;  %v922_v19 = vmul.f32 %v2702_v11, %v2702_v11 }
  0xcc   : > { %801 = vst [vmem:[%s2646_s27 + $0xa8] sm:$0xff] %v2705_v12 }
  0xcd   : > { %v985_v26 = vadd.f32 %v2696_v8, %v922_v19 }
  0xcf   : > { %v711_v34 = vpop.f32.mrf.mxu2  ;;  %v751_v13 = vpop.f32.mrf.mxu3 }
  0xd0   : > { %v634_v15 = vpop.f32.mrf.mxu0  ;;  %v674_v16 = vpop.f32.mrf.mxu1  ;;  %v2758_v37 = vadd.f32 %v2638_v31, %v711_v34 }
  0xd1   : > { %v2717_v17 = vadd.f32 %v2638_v31, %v634_v15  ;;  %v2720_v18 = vadd.f32 %v2638_v31, %v674_v16  ;;  %v2823_v15 = vadd.f32 %v2638_v31, %v749_v0 }
  0xd2   : > { %817 = vst [vmem:[%s2646_s27 + $0x128] sm:$0xff] %v2758_v37 }
  0xd3   : > { %786 = vst [vmem:[%s2646_s27 + $0x30] sm:$0xff] %v2717_v17  ;;  %v923_v25 = vmul.f32 %v2717_v17, %v2717_v17 }
  0xd4   : > { %802 = vst [vmem:[%s2646_s27 + $0xb0] sm:$0xff] %v2720_v18 }
  0xd5   : > { %832 = vst [vmem:[%s2646_s27 + $0x1a0] sm:$0xff] %v2823_v15 }
  0xd7   : > { %v714_v44 = vpop.f32.mrf.mxu2 }
  0xd8   : > { %v636_v21 = vpop.f32.mrf.mxu0  ;;  %v676_v22 = vpop.f32.mrf.mxu1  ;;  %v2782_v46 = vadd.f32 %v2638_v31, %v714_v44  ;;  %v986_v44 = vadd.f32 %v985_v26, %v923_v25 }
  0xd9   : > { %v2732_v23 = vadd.f32 %v2638_v31, %v636_v21  ;;  %v2735_v24 = vadd.f32 %v2638_v31, %v676_v22  ;;  %v2834_v21 = vadd.f32 %v2638_v31, %v751_v13  ;;  %v849_v22 = vadd.f32 %v2691_v5, %v2702_v11 }
  0xda   : > { %818 = vst [vmem:[%s2646_s27 + $0x130] sm:$0xff] %v2782_v46 }
  0xdb   : > { %787 = vst [vmem:[%s2646_s27 + $0x38] sm:$0xff] %v2732_v23 }
  0xdc   : > { %803 = vst [vmem:[%s2646_s27 + $0xb8] sm:$0xff] %v2735_v24 }
  0xdd   : > { %833 = vst [vmem:[%s2646_s27 + $0x1a8] sm:$0xff] %v2834_v21 }
  0xdf   : > { %v716_v53 = vpop.f32.mrf.mxu2 }
  0xe0   : > { %v639_v29 = vpop.f32.mrf.mxu0  ;;  %v679_v30 = vpop.f32.mrf.mxu1  ;;  %v2796_v55 = vadd.f32 %v2638_v31, %v716_v53 }
  0xe1   : > { %v2752_v32 = vadd.f32 %v2638_v31, %v639_v29  ;;  %v2755_v33 = vadd.f32 %v2638_v31, %v679_v30  ;;  %v850_v29 = vadd.f32 %v849_v22, %v2717_v17  ;;  %v924_v30 = vmul.f32 %v2732_v23, %v2732_v23 }
  0xe2   : > { %819 = vst [vmem:[%s2646_s27 + $0x138] sm:$0xff] %v2796_v55 }
  0xe3   : > { %788 = vst [vmem:[%s2646_s27 + $0x40] sm:$0xff] %v2752_v32  ;;  %v851_v8 = vadd.f32 %v850_v29, %v2732_v23  ;;  %v925_v17 = vmul.f32 %v2752_v32, %v2752_v32  ;;  %v987_v45 = vadd.f32 %v986_v44, %v924_v30 }
  0xe4   : > { %804 = vst [vmem:[%s2646_s27 + $0xc0] sm:$0xff] %v2755_v33 }
  0xe5   : > { %v988_v53 = vadd.f32 %v987_v45, %v925_v17 }
  0xe7   : > { %v719_v63 = vpop.f32.mrf.mxu2 }
  0xe8   : > { %v641_v39 = vpop.f32.mrf.mxu0  ;;  %v681_v40 = vpop.f32.mrf.mxu1  ;;  %v2820_v9 = vadd.f32 %v2638_v31, %v719_v63 }
  0xe9   : > { %v2772_v42 = vadd.f32 %v2638_v31, %v641_v39  ;;  %v2775_v43 = vadd.f32 %v2638_v31, %v681_v40  ;;  %v754_v40 = vpop.f32.mrf.mxu3 }
  0xea   : > { %820 = vst [vmem:[%s2646_s27 + $0x140] sm:$0xff] %v2820_v9  ;;  %v2874_v19 = vadd.f32 %v2638_v31, %v754_v40 }
  0xeb   : > { %789 = vst [vmem:[%s2646_s27 + $0x48] sm:$0xff] %v2772_v42 }
  0xec   : > { %805 = vst [vmem:[%s2646_s27 + $0xc8] sm:$0xff] %v2775_v43 }
  0xed   : > { %834 = vst [vmem:[%s2646_s27 + $0x1b0] sm:$0xff] %v2874_v19 }
  0xef   : > { %v721_v10 = vpop.f32.mrf.mxu2 }
  0xf0   : > { %v644_v48 = vpop.f32.mrf.mxu0  ;;  %v684_v50 = vpop.f32.mrf.mxu1  ;;  %v2827_v16 = vadd.f32 %v2638_v31, %v721_v10 }
  0xf1   : > { %v645_v51 = vadd.f32 %v2638_v31, %v644_v48  ;;  %v2793_v52 = vadd.f32 %v2638_v31, %v684_v50  ;;  %v852_v48 = vadd.f32 %v851_v8, %v2752_v32  ;;  %v926_v50 = vmul.f32 %v2772_v42, %v2772_v42 }
  0xf2   : > { %821 = vst [vmem:[%s2646_s27 + $0x148] sm:$0xff] %v2827_v16 }
  0xf3   : > { %790 = vst [vmem:[%s2646_s27 + $0x50] sm:$0xff] %v645_v51  ;;  %v853_v54 = vadd.f32 %v852_v48, %v2772_v42  ;;  %v756_v42 = vpop.f32.mrf.mxu3 }
  0xf4   : > { %806 = vst [vmem:[%s2646_s27 + $0xd0] sm:$0xff] %v2793_v52  ;;  %v2883_v29 = vadd.f32 %v2638_v31, %v756_v42 }
  0xf5   : > { %v854_v23 = vadd.f32 %v853_v54, %v645_v51 }
  0xf6   : > { %835 = vst [vmem:[%s2646_s27 + $0x1b8] sm:$0xff] %v2883_v29 }
  0xf7   : > { %v724_v39 = vpop.f32.mrf.mxu2 }
  0xf8   : > { %v646_v58 = vpop.f32.mrf.mxu0  ;;  %v686_v59 = vpop.f32.mrf.mxu1  ;;  %v2871_v10 = vadd.f32 %v2638_v31, %v724_v39 }
  0xf9   : > { %v647_v60 = vadd.f32 %v2638_v31, %v646_v58  ;;  %v2810_v61 = vadd.f32 %v2638_v31, %v686_v59  ;;  %v927_v58 = vmul.f32 %v645_v51, %v645_v51  ;;  %v989_v59 = vadd.f32 %v988_v53, %v926_v50 }
  0xfa   : > { %822 = vst [vmem:[%s2646_s27 + $0x150] sm:$0xff] %v2871_v10 }
  0xfb   : > { %791 = vst [vmem:[%s2646_s27 + $0x58] sm:$0xff] %v647_v60  ;;  %v990_v51 = vadd.f32 %v989_v59, %v927_v58  ;;  %v855_v22 = vadd.f32 %v854_v23, %v647_v60  ;;  %v759_v53 = vpop.f32.mrf.mxu3  ;;  %v933_v59 = vmul.f32 %v2642_v35, %v2642_v35 }
  0xfc   : > { %807 = vst [vmem:[%s2646_s27 + $0xd8] sm:$0xff] %v2810_v61 }
  0xff   : > { %v726_v13 = vpop.f32.mrf.mxu2 }
 0x100   : > { %v649_v1 = vpop.f32.mrf.mxu0  ;;  %v689_v3 = vpop.f32.mrf.mxu1  ;;  %v2878_v26 = vadd.f32 %v2638_v31, %v726_v13  ;;  %v935_v13 = vmul.f32 %v2664_v49, %v2664_v49 }
 0x101   : > { %v650_v6 = vadd.f32 %v2638_v31, %v649_v1  ;;  %v2817_v7 = vadd.f32 %v2638_v31, %v689_v3  ;;  %v928_v1 = vmul.f32 %v647_v60, %v647_v60 }
 0x102   : > { %823 = vst [vmem:[%s2646_s27 + $0x158] sm:$0xff] %v2878_v26 }
 0x103   : > { %792 = vst [vmem:[%s2646_s27 + $0x60] sm:$0xff] %v650_v6  ;;  %v929_v25 = vmul.f32 %v650_v6, %v650_v6  ;;  %v991_v30 = vadd.f32 %v990_v51, %v928_v1 }
 0x104   : > { %808 = vst [vmem:[%s2646_s27 + $0xe0] sm:$0xff] %v2817_v7 }
 0x105   : > { %v992_v60 = vadd.f32 %v991_v30, %v929_v25  ;;  %v761_v30 = vpop.f32.mrf.mxu3 }
 0x107   : > { %v729_v50 = vpop.f32.mrf.mxu2 }
 0x108   : > { %v651_v34 = vpop.f32.mrf.mxu0  ;;  %v691_v36 = vpop.f32.mrf.mxu1 }
 0x109   : > { %v652_v5 = vadd.f32 %v2638_v31, %v651_v34  ;;  %v2854_v11 = vadd.f32 %v2638_v31, %v691_v36  ;;  %v856_v34 = vadd.f32 %v855_v22, %v650_v6  ;;  %v2910_v22 = vadd.f32 %v2638_v31, %v729_v50 }
 0x10b   : > { %793 = vst [vmem:[%s2646_s27 + $0x68] sm:$0xff] %v652_v5  ;;  %v930_v36 = vmul.f32 %v652_v5, %v652_v5  ;;  %v857_v39 = vadd.f32 %v856_v34, %v652_v5 }
 0x10c   : > { %809 = vst [vmem:[%s2646_s27 + $0xe8] sm:$0xff] %v2854_v11 }
 0x10d   : > { %v993_v17 = vadd.f32 %v992_v60, %v930_v36  ;;  %824 = vst [vmem:[%s2646_s27 + $0x160] sm:$0xff] %v2910_v22 }
 0x10f   : > { %v731_v25 = vpop.f32.mrf.mxu2 }
 0x110   : > { %v654_v63 = vpop.f32.mrf.mxu0  ;;  %v694_v0 = vpop.f32.mrf.mxu1  ;;  %v2916_v34 = vadd.f32 %v2638_v31, %v731_v25 }
 0x111   : > { %v655_v3 = vadd.f32 %v2638_v31, %v654_v63  ;;  %v2868_v32 = vadd.f32 %v2638_v31, %v694_v0  ;;  %v934_v0 = vmul.f32 %v2657_v41, %v2657_v41 }
 0x112   : > { %825 = vst [vmem:[%s2646_s27 + $0x168] sm:$0xff] %v2916_v34 }
 0x113   : > { %794 = vst [vmem:[%s2646_s27 + $0x70] sm:$0xff] %v655_v3  ;;  %v931_v40 = vmul.f32 %v655_v3, %v655_v3  ;;  %v858_v45 = vadd.f32 %v857_v39, %v655_v3  ;;  %v937_v39 = vmul.f32 %v2685_v2, %v2685_v2 }
 0x114   : > { %810 = vst [vmem:[%s2646_s27 + $0xf0] sm:$0xff] %v2868_v32 }
 0x115   : > { %v994_v54 = vadd.f32 %v993_v17, %v931_v40 }
 0x118   : > { %v656_v44 = vpop.f32.mrf.mxu0  ;;  %v696_v8 = vpop.f32.mrf.mxu1 }
 0x119   : > { %v657_v6 = vadd.f32 %v2638_v31, %v656_v44  ;;  %v2895_v48 = vadd.f32 %v2638_v31, %v696_v8  ;;  %v938_v8 = vmul.f32 %v2705_v12, %v2705_v12 }
 0x11b   : > { %795 = vst [vmem:[%s2646_s27 + $0x78] sm:$0xff] %v657_v6  ;;  %v859_v5 = vadd.f32 %v858_v45, %v657_v6  ;;  %v932_v58 = vmul.f32 %v657_v6, %v657_v6  ;;  %v939_v45 = vmul.f32 %v2720_v18, %v2720_v18 }
 0x11c   : > { %811 = vst [vmem:[%s2646_s27 + $0xf8] sm:$0xff] %v2895_v48 }
 0x11d   : > { %v860_v23 = vadd.f32 %v859_v5, %v2642_v35  ;;  %v995_v63 = vadd.f32 %v994_v54, %v932_v58  ;;  %v2913_v35 = vadd.f32 %v2638_v31, %v759_v53  ;;  %v734_v53 = vpop.f32.mrf.mxu2  ;;  %v764_v54 = vpop.f32.mrf.mxu3 }
 0x11f   : > { %v861_v1 = vadd.f32 %v860_v23, %v2657_v41  ;;  %v996_v3 = vadd.f32 %v995_v63, %v933_v59  ;;  %v2919_v41 = vadd.f32 %v2638_v31, %v761_v30  ;;  %836 = vst [vmem:[%s2646_s27 + $0x1c0] sm:$0xff] %v2913_v35  ;;  %v941_v59 = vmul.f32 %v2755_v33, %v2755_v33 }
 0x120   : > { %v942_v63 = vmul.f32 %v2775_v43, %v2775_v43 }
 0x121   : > { %v862_v42 = vadd.f32 %v861_v1, %v2664_v49  ;;  %v997_v51 = vadd.f32 %v996_v3, %v934_v0  ;;  %v936_v49 = vmul.f32 %v2673_v57, %v2673_v57  ;;  %837 = vst [vmem:[%s2646_s27 + $0x1c8] sm:$0xff] %v2919_v41  ;;  %v943_v1 = vmul.f32 %v2793_v52, %v2793_v52 }
 0x123   : > { %v863_v36 = vadd.f32 %v862_v42, %v2673_v57  ;;  %v998_v60 = vadd.f32 %v997_v51, %v935_v13  ;;  %v2954_v13 = vadd.f32 %v2638_v31, %v734_v53  ;;  %v949_v53 = vmul.f32 %v2679_v62, %v2679_v62 }
 0x125   : > { %v864_v40 = vadd.f32 %v863_v36, %v2685_v2  ;;  %v999_v44 = vadd.f32 %v998_v60, %v936_v49  ;;  %v940_v2 = vmul.f32 %v2735_v24, %v2735_v24  ;;  %v736_v42 = vpop.f32.mrf.mxu2  ;;  %v766_v51 = vpop.f32.mrf.mxu3  ;;  %826 = vst [vmem:[%s2646_s27 + $0x170] sm:$0xff] %v2954_v13  ;;  %v945_v60 = vmul.f32 %v2817_v7, %v2817_v7 }
 0x126   : > { %v2960_v25 = vadd.f32 %v2638_v31, %v736_v42 }
 0x127   : > { %v865_v57 = vadd.f32 %v864_v40, %v2705_v12  ;;  %v1000_v17 = vadd.f32 %v999_v44, %v937_v39 }
 0x128   : > { %827 = vst [vmem:[%s2646_s27 + $0x178] sm:$0xff] %v2960_v25 }
 0x129   : > { %v1001_v6 = vadd.f32 %v1000_v17, %v938_v8  ;;  %v866_v50 = vadd.f32 %v865_v57, %v2720_v18  ;;  %v947_v17 = vmul.f32 %v2868_v32, %v2868_v32 }
 0x12b   : > { %v867_v5 = vadd.f32 %v866_v50, %v2735_v24  ;;  %v1002_v58 = vadd.f32 %v1001_v6, %v939_v45  ;;  %v948_v50 = vmul.f32 %v2895_v48, %v2895_v48 }
 0x12d   : > { %v868_v12 = vadd.f32 %v867_v5, %v2755_v33  ;;  %v1003_v23 = vadd.f32 %v1002_v58, %v940_v2  ;;  %v2957_v33 = vadd.f32 %v2638_v31, %v764_v54  ;;  %v769_v45 = vpop.f32.mrf.mxu3  ;;  %v950_v2 = vmul.f32 %v2688_v4, %v2688_v4 }
 0x12e   : > { %v951_v58 = vmul.f32 %v2712_v14, %v2712_v14 }
 0x12f   : > { %v869_v18 = vadd.f32 %v868_v12, %v2775_v43  ;;  %v1004_v0 = vadd.f32 %v1003_v23, %v941_v59  ;;  %v2963_v43 = vadd.f32 %v2638_v31, %v766_v51  ;;  %838 = vst [vmem:[%s2646_s27 + $0x1d0] sm:$0xff] %v2957_v33  ;;  %v2998_v12 = vadd.f32 %v2638_v31, %v769_v45 }
 0x131   : > { %v870_v24 = vadd.f32 %v869_v18, %v2793_v52  ;;  %v1005_v3 = vadd.f32 %v1004_v0, %v942_v63  ;;  %v944_v52 = vmul.f32 %v2810_v61, %v2810_v61  ;;  %839 = vst [vmem:[%s2646_s27 + $0x1d8] sm:$0xff] %v2963_v43 }
 0x132   : > { %840 = vst [vmem:[%s2646_s27 + $0x1e0] sm:$0xff] %v2998_v12 }
 0x133   : > { %v871_v30 = vadd.f32 %v870_v24, %v2810_v61  ;;  %v1006_v49 = vadd.f32 %v1005_v3, %v943_v1  ;;  %v946_v61 = vmul.f32 %v2854_v11, %v2854_v11  ;;  %v954_v24 = vmul.f32 %v2758_v37, %v2758_v37 }
 0x135   : > { %v872_v36 = vadd.f32 %v871_v30, %v2817_v7  ;;  %v1007_v39 = vadd.f32 %v1006_v49, %v944_v52  ;;  %v771_v23 = vpop.f32.mrf.mxu3  ;;  %v956_v49 = vmul.f32 %v2796_v55, %v2796_v55 }
 0x136   : > { %v3001_v63 = vadd.f32 %v2638_v31, %v771_v23 }
 0x137   : > { %v1008_v40 = vadd.f32 %v1007_v39, %v945_v60  ;;  %v873_v44 = vadd.f32 %v872_v36, %v2854_v11  ;;  %v957_v60 = vmul.f32 %v2820_v9, %v2820_v9 }
 0x138   : > { %841 = vst [vmem:[%s2646_s27 + $0x1e8] sm:$0xff] %v3001_v63 }
 0x139   : > { %v1009_v8 = vadd.f32 %v1008_v40, %v946_v61  ;;  %v874_v57 = vadd.f32 %v873_v44, %v2868_v32  ;;  %v958_v40 = vmul.f32 %v2827_v16, %v2827_v16  ;;  %v959_v61 = vmul.f32 %v2871_v10, %v2871_v10 }
 0x13b   : > { %v1010_v6 = vadd.f32 %v1009_v8, %v947_v17  ;;  %v875_v7 = vadd.f32 %v874_v57, %v2895_v48 }
 0x13d   : > { %v876_v11 = vadd.f32 %v875_v7, %v2679_v62  ;;  %v1011_v54 = vadd.f32 %v1010_v6, %v948_v50  ;;  %v952_v62 = vmul.f32 %v2723_v20, %v2723_v20  ;;  %v774_v30 = vpop.f32.mrf.mxu3  ;;  %v960_v6 = vmul.f32 %v2878_v26, %v2878_v26 }
 0x13e   : > { %v3032_v57 = vadd.f32 %v2638_v31, %v774_v30  ;;  %v961_v50 = vmul.f32 %v2910_v22, %v2910_v22 }
 0x13f   : > { %v877_v32 = vadd.f32 %v876_v11, %v2688_v4  ;;  %v1012_v5 = vadd.f32 %v1011_v54, %v949_v53  ;;  %v962_v11 = vmul.f32 %v2916_v34, %v2916_v34 }
 0x140   : > { %842 = vst [vmem:[%s2646_s27 + $0x1f0] sm:$0xff] %v3032_v57 }
 0x141   : > { %v878_v59 = vadd.f32 %v877_v32, %v2712_v14  ;;  %v1013_v48 = vadd.f32 %v1012_v5, %v950_v2  ;;  %v953_v14 = vmul.f32 %v2742_v27, %v2742_v27  ;;  %v963_v2 = vmul.f32 %v2954_v13, %v2954_v13 }
 0x143   : > { %v879_v18 = vadd.f32 %v878_v59, %v2723_v20  ;;  %v1014_v4 = vadd.f32 %v1013_v48, %v951_v58  ;;  %v955_v20 = vmul.f32 %v2782_v46, %v2782_v46  ;;  %v964_v58 = vmul.f32 %v2960_v25, %v2960_v25 }
 0x145   : > { %v880_v0 = vadd.f32 %v879_v18, %v2742_v27  ;;  %v1015_v1 = vadd.f32 %v1014_v4, %v952_v62  ;;  %v776_v17 = vpop.f32.mrf.mxu3 }
 0x146   : > { %v3035_v45 = vadd.f32 %v2638_v31, %v776_v17 }
 0x147   : > { %v1016_v3 = vadd.f32 %v1015_v1, %v953_v14  ;;  %v881_v42 = vadd.f32 %v880_v0, %v2758_v37 }
 0x148   : > { %843 = vst [vmem:[%s2646_s27 + $0x1f8] sm:$0xff] %v3035_v45 }
 0x149   : > { %v882_v51 = vadd.f32 %v881_v42, %v2782_v46  ;;  %v1017_v52 = vadd.f32 %v1016_v3, %v954_v24 }
 0x14b   : > { %v883_v36 = vadd.f32 %v882_v51, %v2796_v55  ;;  %v1018_v27 = vadd.f32 %v1017_v52, %v955_v20 }
 0x14d   : > { %v884_v37 = vadd.f32 %v883_v36, %v2820_v9  ;;  %v1019_v39 = vadd.f32 %v1018_v27, %v956_v49 }
 0x14f   : > { %v885_v46 = vadd.f32 %v884_v37, %v2827_v16  ;;  %v1020_v44 = vadd.f32 %v1019_v39, %v957_v60 }
 0x151   : > { %v886_v55 = vadd.f32 %v885_v46, %v2871_v10  ;;  %v1021_v8 = vadd.f32 %v1020_v44, %v958_v40  ;;  %v976_v40 = vmul.f32 %v2963_v43, %v2963_v43 }
 0x153   : > { %v887_v9 = vadd.f32 %v886_v55, %v2878_v26  ;;  %v1022_v16 = vadd.f32 %v1021_v8, %v959_v61  ;;  %v977_v61 = vmul.f32 %v2998_v12, %v2998_v12  ;;  %v978_v8 = vmul.f32 %v3001_v63, %v3001_v63 }
 0x155   : > { %v1023_v7 = vadd.f32 %v1022_v16, %v960_v6  ;;  %v888_v10 = vadd.f32 %v887_v9, %v2910_v22  ;;  %v965_v22 = vmul.f32 %v2745_v28, %v2745_v28  ;;  %v979_v9 = vmul.f32 %v3032_v57, %v3032_v57 }
 0x156   : > { %v980_v16 = vmul.f32 %v3035_v45, %v3035_v45 }
 0x157   : > { %v1024_v53 = vadd.f32 %v1023_v7, %v961_v50  ;;  %v889_v31 = vadd.f32 %v888_v10, %v2916_v34  ;;  %v966_v34 = vmul.f32 %v2761_v38, %v2761_v38 }
 0x159   : > { %v1025_v54 = vadd.f32 %v1024_v53, %v962_v11  ;;  %v890_v26 = vadd.f32 %v889_v31, %v2954_v13  ;;  %v967_v13 = vmul.f32 %v2785_v47, %v2785_v47 }
 0x15b   : > { %v1026_v32 = vadd.f32 %v1025_v54, %v963_v2  ;;  %v891_v5 = vadd.f32 %v890_v26, %v2960_v25  ;;  %v968_v25 = vmul.f32 %v2799_v56, %v2799_v56  ;;  %v844_v2 = vld [vmem:[#allocation3] sm:$0x1] }
 0x15d   : > { %v892_v59 = vadd.f32 %v891_v5, %v2745_v28  ;;  %v1027_v48 = vadd.f32 %v1026_v32, %v964_v58  ;;  %v969_v28 = vmul.f32 %v2823_v15, %v2823_v15 }
 0x15f   : > { %v893_v23 = vadd.f32 %v892_v59, %v2761_v38  ;;  %v1028_v62 = vadd.f32 %v1027_v48, %v965_v22  ;;  %v970_v38 = vmul.f32 %v2834_v21, %v2834_v21 }
 0x161   : > { %v894_v18 = vadd.f32 %v893_v23, %v2785_v47  ;;  %v1029_v4 = vadd.f32 %v1028_v62, %v966_v34  ;;  %v971_v47 = vmul.f32 %v2874_v19, %v2874_v19 }
 0x163   : > { %v895_v14 = vadd.f32 %v894_v18, %v2799_v56  ;;  %v1030_v0 = vadd.f32 %v1029_v4, %v967_v13  ;;  %v972_v56 = vmul.f32 %v2883_v29, %v2883_v29 }
 0x165   : > { %v896_v1 = vadd.f32 %v895_v14, %v2823_v15  ;;  %v1031_v24 = vadd.f32 %v1030_v0, %v968_v25  ;;  %v973_v15 = vmul.f32 %v2913_v35, %v2913_v35 }
 0x167   : > { %v1032_v3 = vadd.f32 %v1031_v24, %v969_v28  ;;  %v897_v42 = vadd.f32 %v896_v1, %v2834_v21  ;;  %v974_v21 = vmul.f32 %v2919_v41, %v2919_v41 }
 0x169   : > { %v898_v20 = vadd.f32 %v897_v42, %v2874_v19  ;;  %v1033_v51 = vadd.f32 %v1032_v3, %v970_v38  ;;  %v975_v19 = vmul.f32 %v2957_v33, %v2957_v33 }
 0x16b   : > { %v899_v52 = vadd.f32 %v898_v20, %v2883_v29  ;;  %v1034_v30 = vadd.f32 %v1033_v51, %v971_v47 }
 0x16d   : > { %v900_v49 = vadd.f32 %v899_v52, %v2913_v35  ;;  %v1035_v36 = vadd.f32 %v1034_v30, %v972_v56 }
 0x16f   : > { %v901_v27 = vadd.f32 %v900_v49, %v2919_v41  ;;  %v1036_v60 = vadd.f32 %v1035_v36, %v973_v15 }
 0x171   : > { %v902_v37 = vadd.f32 %v901_v27, %v2957_v33  ;;  %v1037_v39 = vadd.f32 %v1036_v60, %v974_v21 }
 0x173   : > { %v903_v29 = vadd.f32 %v902_v37, %v2963_v43  ;;  %v1038_v46 = vadd.f32 %v1037_v39, %v975_v19 }
 0x175   : > { %v1039_v35 = vadd.f32 %v1038_v46, %v976_v40  ;;  %v904_v44 = vadd.f32 %v903_v29, %v2998_v12 }
 0x177   : > { %v1040_v41 = vadd.f32 %v1039_v35, %v977_v61  ;;  %v905_v55 = vadd.f32 %v904_v44, %v3001_v63 }
 0x179   : > { %v1041_v33 = vadd.f32 %v1040_v41, %v978_v8  ;;  %v906_v17 = vadd.f32 %v905_v55, %v3032_v57  ;;  %v916_v57 = vld [vmem:[#allocation4] sm:$0x1] }
 0x17b   : > { %v1042_v43 = vadd.f32 %v1041_v33, %v979_v9  ;;  %v907_v6 = vadd.f32 %v906_v17, %v3035_v45 }
 0x17d   : > { %v908_v7 = vrot.slane %v907_v6, 4  ;;  %v1043_v12 = vadd.f32 %v1042_v43, %v980_v16 }
 0x17f   : > { %v909_v10 = vadd.f32 %v908_v7, %v907_v6  ;;  %v1044_v50 = vrot.slane %v1043_v12, 4 }
 0x181   : > { %v910_v53 = vrot.slane %v909_v10, 2  ;;  %v1045_v31 = vadd.f32 %v1044_v50, %v1043_v12 }
 0x183   : > { %v911_v11 = vadd.f32 %v910_v53, %v909_v10  ;;  %v1046_v63 = vrot.slane %v1045_v31, 2 }
 0x185   : > { %v912_v54 = vrot.slane %v911_v11, 1  ;;  %v1047_v26 = vadd.f32 %v1046_v63, %v1045_v31 }
 0x187   : > { %v913_v32 = vadd.f32 %v912_v54, %v911_v11  ;;  %v1048_v5 = vrot.slane %v1047_v26, 1 }
 0x189   : > { %v914_v58 = vadd.f32 %v913_v32, %v844_v2  ;;  %v1049_v22 = vadd.f32 %v1048_v5, %v1047_v26 }
 0x18b   : > { %915 = vst [vmem:[#allocation3] sm:$0x1] %v914_v58  ;;  %v1050_v59 = vadd.f32 %v1049_v22, %v916_v57 }
 0x18d   : > { %1051 = vst [vmem:[#allocation4] sm:$0x1] %v1050_v59 }
 0x18e PF: > { %p2263_p9 = scmp.ne.s32.totalorder %s2477_s19, 1 }
 0x18f   : > { %p2264_p10 = scmp.ne.s32.totalorder (!%p2263_p9), %s2473_s18, 0 }
 0x190   : > { %1055 = sbr.rel (%p2263_p9) target bundleno = 1007 (0x3ef), region = 52 }
 0x195   : > { %1059 = sbr.rel (%p2264_p10) target bundleno = 446 (0x1be), region = 56 }
 0x19a   : > { %v1060_v45 = vld [vmem:[#allocation3] sm:$0x1]  ;;  %v1062_v48 = vld [vmem:[#allocation4] sm:$0x1]  ;;  %v1080_v47 = vld [vmem:[%s3581_s4 + $0x2] sm:$0x1] }
 0x19b   : > { %v1061_v34 = vmul.f32 0.0009765625, %v1060_v45  ;;  %v1063_v23 = vmul.f32 0.0009765625, %v1062_v48  ;;  %v1067_v24 = vld [vmem:[%s3581_s4 + $0x1] sm:$0x1] }
 0x19d   : > { %v1064_v62 = vmul.f32 %v1061_v34, %v1061_v34 }
 0x19f   : > { %v1065_v13 = vsub.f32 %v1063_v23, %v1064_v62 }
 0x1a1   : > { %v1066_v18 = vmax.f32 %v1065_v13, 0.0 }
 0x1a3   : > { %v1068_v4 = vadd.f32 1e-05, %v1066_v18 }
 0x1a5   : > { %2445 = vrsqrt.f32 %v1068_v4  ;;  %vm1075_vm1 = vweird.f32 %v1068_v4 }
 0x1ab   : > { %v2446_v25 = vpop.eup %2445 }
 0x1ac   : > { %v1070_v14 = vmul.f32 %v2446_v25, %v1068_v4  ;;  %vm1076_vm2 = vweird.f32 %v2446_v25 }
 0x1ad   : > { %vm1077_vm3 = vmor %vm1075_vm1, %vm1076_vm2 }
 0x1ae   : > { %v1071_v0 = vmul.f32 %v2446_v25, %v1070_v14 }
 0x1b0   : > { %v1072_v28 = vmul.f32 0.5, %v1071_v0 }
 0x1b2   : > { %v1073_v1 = vsub.f32 1.5, %v1072_v28 }
 0x1b4   : > { %v1074_v38 = vmul.f32 %v2446_v25, %v1073_v1 }
 0x1b6   : > { %v1078_v3 = vsel %vm1077_vm3, %v2446_v25, %v1074_v38 }
 0x1b7   : > { %v1079_v42 = vmul.f32 %v1078_v3, %v1067_v24 }
 0x1b9   : > { %1083 = vst [vmem:[#allocation5] sm:$0x1] %v1079_v42  ;;  %v1081_v20 = vmul.f32 %v1079_v42, %v1061_v34 }
 0x1bb   : > { %v1082_v51 = vsub.f32 %v1080_v47, %v1081_v20 }
 0x1bd   : > { %1084 = vst [vmem:[#allocation5 + $0x1] sm:$0x1] %v1082_v51 }
 0x1be PF: > { %v2372_v56 = vld [vmem:[%s3579_s2 + $0x38] sm:$0xff]  ;;  %v2371_v52 = vld [vmem:[%s3579_s2 + $0x30] sm:$0xff]  ;;  %v2370_v30 = vld [vmem:[%s3579_s2 + $0x28] sm:$0xff]  ;;  %s3129_s25 = scalar_lea.vmem [#allocation2], %s2092_s28 }
 0x1bf   : > { %1444 = vmatpush.bf16.msra.mxu0 %v2372_v56  ;;  %2387 = vmatpush.bf16.msra.mxu2 %v2372_v56  ;;  %v2369_v15 = vld [vmem:[%s3579_s2 + $0x20] sm:$0xff]  ;;  %v2368_v49 = vld [vmem:[%s3579_s2 + $0x18] sm:$0xff]  ;;  %v1087_v27 = vld [vmem:[%s3129_s25 + $0x8] sm:$0xff] }
 0x1c0   : > { %v1086_v36 = vld [vmem:[%s3129_s25] sm:$0xff]  ;;  %v1119_v19 = vld [vmem:[%s3129_s25 + $0x108] sm:$0xff]  ;;  %v2367_v35 = vld [vmem:[%s3579_s2 + $0x10] sm:$0xff] }
 0x1c1   : > { %v3132_v21 = vld [vmem:[#allocation5] ss:$0 sm:$0xff]  ;;  %v2366_v8 = vld [vmem:[%s3579_s2 + $0x8] sm:$0xff]  ;;  %v1088_v12 = vld [vmem:[%s3129_s25 + $0x10] sm:$0xff] }
 0x1c2   : > { %v1118_v60 = vld [vmem:[%s3129_s25 + $0x100] sm:$0xff]  ;;  %v1152_v37 = vmul.f32 %v3132_v21, %v1086_v36  ;;  %v1153_v39 = vmul.f32 %v3132_v21, %v1087_v27  ;;  %v1185_v46 = vmul.f32 %v3132_v21, %v1119_v19  ;;  %v1089_v10 = vld [vmem:[%s3129_s25 + $0x18] sm:$0xff]  ;;  %v1120_v50 = vld [vmem:[%s3129_s25 + $0x110] sm:$0xff]  ;;  %v1154_v31 = vmul.f32 %v3132_v21, %v1088_v12 }
 0x1c3   : > { %1445 = vmatpush.bf16.msra.mxu0 %v2371_v52  ;;  %2388 = vmatpush.bf16.msra.mxu2 %v2371_v52  ;;  %v1184_v40 = vmul.f32 %v3132_v21, %v1118_v60  ;;  %v2365_v6 = vld [vmem:[%s3579_s2] sm:$0xff]  ;;  %v1121_v53 = vld [vmem:[%s3129_s25 + $0x118] sm:$0xff]  ;;  %v1155_v11 = vmul.f32 %v3132_v21, %v1089_v10  ;;  %v1186_v63 = vmul.f32 %v3132_v21, %v1120_v50  ;;  %v1091_v23 = vld [vmem:[%s3129_s25 + $0x28] sm:$0xff] }
 0x1c4   : > { %v3139_v29 = vld [vmem:[#allocation5 + $0x1] ss:$0 sm:$0xff]  ;;  %v1187_v54 = vmul.f32 %v3132_v21, %v1121_v53  ;;  %v1123_v13 = vld [vmem:[%s3129_s25 + $0x128] sm:$0xff]  ;;  %v1157_v4 = vmul.f32 %v3132_v21, %v1091_v23  ;;  %v1092_v56 = vld [vmem:[%s3129_s25 + $0x30] sm:$0xff] }
 0x1c5   : > { %v1218_v44 = vadd.f32 %v3139_v29, %v1152_v37  ;;  %v1219_v61 = vadd.f32 %v3139_v29, %v1153_v39  ;;  %v1250_v41 = vadd.f32 %v3139_v29, %v1184_v40  ;;  %v1251_v55 = vadd.f32 %v3139_v29, %v1185_v46  ;;  %v1090_v34 = vld [vmem:[%s3129_s25 + $0x20] sm:$0xff]  ;;  %v1093_v52 = vld [vmem:[%s3129_s25 + $0x38] sm:$0xff] }
 0x1c6   : > { %v1220_v26 = vadd.f32 %v3139_v29, %v1154_v31  ;;  %v1221_v2 = vadd.f32 %v3139_v29, %v1155_v11  ;;  %v1252_v32 = vadd.f32 %v3139_v29, %v1186_v63  ;;  %v1253_v5 = vadd.f32 %v3139_v29, %v1187_v54  ;;  %v1122_v62 = vld [vmem:[%s3129_s25 + $0x120] sm:$0xff] }
 0x1c7   : > { %1446 = vmatpush.bf16.msra.mxu0 %v2370_v30  ;;  %2389 = vmatpush.bf16.msra.mxu2 %v2370_v30  ;;  %v1282_v33 = vmax.f32 %v1218_v44, 0.0  ;;  %v1283_v17 = vmax.f32 %v1219_v61, 0.0  ;;  %v1314_v9 = vmax.f32 %v1250_v41, 0.0  ;;  %v1315_v43 = vmax.f32 %v1251_v55, 0.0  ;;  %v1124_v30 = vld [vmem:[%s3129_s25 + $0x130] sm:$0xff] }
 0x1c8   : > { %v1284_v57 = vmax.f32 %v1220_v26, 0.0  ;;  %v1285_v58 = vmax.f32 %v1221_v2, 0.0  ;;  %v1316_v22 = vmax.f32 %v1252_v32, 0.0  ;;  %v1317_v59 = vmax.f32 %v1253_v5, 0.0  ;;  %v1096_v32 = vld [vmem:[%s3129_s25 + $0x50] sm:$0xff]  ;;  %v1097_v5 = vld [vmem:[%s3129_s25 + $0x58] sm:$0xff] }
 0x1c9   : > { %v1346_v16 = vpack.c.bf16 %v1283_v17, %v1282_v33  ;;  %v1362_v7 = vpack.c.bf16 %v1315_v43, %v1314_v9  ;;  %v1156_v18 = vmul.f32 %v3132_v21, %v1090_v34  ;;  %v1188_v25 = vmul.f32 %v3132_v21, %v1122_v62  ;;  %v1095_v33 = vld [vmem:[%s3129_s25 + $0x48] sm:$0xff]  ;;  %v1126_v17 = vld [vmem:[%s3129_s25 + $0x140] sm:$0xff]  ;;  %v2380_v34 = vld [vmem:[%s3580_s3 + $0x38] sm:$0xff] }
 0x1ca   : > { %v1347_v45 = vpack.c.bf16 %v1285_v58, %v1284_v57  ;;  %v1363_v48 = vpack.c.bf16 %v1317_v59, %v1316_v22  ;;  %v1189_v14 = vmul.f32 %v3132_v21, %v1123_v13  ;;  %v1223_v28 = vadd.f32 %v3139_v29, %v1157_v4  ;;  %v1127_v9 = vld [vmem:[%s3129_s25 + $0x148] sm:$0xff]  ;;  %v1128_v57 = vld [vmem:[%s3129_s25 + $0x150] sm:$0xff]  ;;  %v1129_v58 = vld [vmem:[%s3129_s25 + $0x158] sm:$0xff]  ;;  %1775 = vmatpush.bf16.msra.mxu1 %v2380_v34 }
 0x1cb   : > { %1447 = vmatpush.bf16.msra.mxu0 %v2369_v15  ;;  %2390 = vmatpush.bf16.msra.mxu2 %v2369_v15  ;;  %v1222_v0 = vadd.f32 %v3139_v29, %v1156_v18  ;;  %v1254_v1 = vadd.f32 %v3139_v29, %v1188_v25  ;;  %v1125_v15 = vld [vmem:[%s3129_s25 + $0x138] sm:$0xff]  ;;  %v1159_v36 = vmul.f32 %v3132_v21, %v1093_v52 }
 0x1cc   : > { %v1255_v24 = vadd.f32 %v3139_v29, %v1189_v14  ;;  %v1287_v3 = vmax.f32 %v1223_v28, 0.0  ;;  %v1190_v27 = vmul.f32 %v3132_v21, %v1124_v30  ;;  %v1191_v60 = vmul.f32 %v3132_v21, %v1125_v15  ;;  %2395 = vmatpush.bf16.msra.mxu3 %v2380_v34  ;;  %v2378_v30 = vld [vmem:[%s3580_s3 + $0x28] sm:$0xff] }
 0x1cd   : > { %v1286_v38 = vmax.f32 %v1222_v0, 0.0  ;;  %v1318_v42 = vmax.f32 %v1254_v1, 0.0  ;;  %v1225_v37 = vadd.f32 %v3139_v29, %v1159_v36  ;;  %v1162_v22 = vmul.f32 %v3132_v21, %v1096_v32  ;;  %v1102_v32 = vld [vmem:[%s3129_s25 + $0x80] sm:$0xff] }
 0x1ce   : > { %v1319_v47 = vmax.f32 %v1255_v24, 0.0  ;;  %v1256_v39 = vadd.f32 %v3139_v29, %v1190_v27  ;;  %v1257_v40 = vadd.f32 %v3139_v29, %v1191_v60  ;;  %v1163_v59 = vmul.f32 %v3132_v21, %v1097_v5  ;;  %v1098_v24 = vld [vmem:[%s3129_s25 + $0x60] sm:$0xff]  ;;  %v1103_v5 = vld [vmem:[%s3129_s25 + $0x88] sm:$0xff] }
 0x1cf   : > { %1448 = vmatpush.bf16.msra.mxu0 %v2368_v49  ;;  %2391 = vmatpush.bf16.msra.mxu2 %v2368_v49  ;;  %v1348_v20 = vpack.c.bf16 %v1287_v3, %v1286_v38  ;;  %v1158_v49 = vmul.f32 %v3132_v21, %v1092_v56  ;;  %v1228_v23 = vadd.f32 %v3139_v29, %v1162_v22  ;;  %v1099_v38 = vld [vmem:[%s3129_s25 + $0x68] sm:$0xff]  ;;  %v1130_v3 = vld [vmem:[%s3129_s25 + $0x160] sm:$0xff] }
 0x1d0   : > { %v1364_v51 = vpack.c.bf16 %v1319_v47, %v1318_v42  ;;  %v1320_v44 = vmax.f32 %v1256_v39, 0.0  ;;  %v1321_v61 = vmax.f32 %v1257_v40, 0.0  ;;  %v1229_v62 = vadd.f32 %v3139_v29, %v1163_v59  ;;  %v1131_v42 = vld [vmem:[%s3129_s25 + $0x168] sm:$0xff]  ;;  %v2377_v60 = vld [vmem:[%s3580_s3 + $0x20] sm:$0xff] }
 0x1d1   : > { %v1224_v19 = vadd.f32 %v3139_v29, %v1158_v49  ;;  %v1292_v4 = vmax.f32 %v1228_v23, 0.0  ;;  %v1164_v47 = vmul.f32 %v3132_v21, %v1098_v24  ;;  %v1196_v56 = vmul.f32 %v3132_v21, %v1130_v3  ;;  %v1136_v3 = vld [vmem:[%s3129_s25 + $0x190] sm:$0xff] }
 0x1d2   : > { %v1365_v55 = vpack.c.bf16 %v1321_v61, %v1320_v44  ;;  %v1293_v25 = vmax.f32 %v1229_v62, 0.0  ;;  %v1197_v52 = vmul.f32 %v3132_v21, %v1131_v42  ;;  %v1100_v61 = vld [vmem:[%s3129_s25 + $0x70] sm:$0xff]  ;;  %v1168_v22 = vmul.f32 %v3132_v21, %v1102_v32  ;;  %v1137_v42 = vld [vmem:[%s3129_s25 + $0x198] sm:$0xff] }
 0x1d3   : > { %1449 = vmatpush.bf16.msra.mxu0 %v2367_v35  ;;  %2392 = vmatpush.bf16.msra.mxu2 %v2367_v35  ;;  %v1288_v46 = vmax.f32 %v1224_v19, 0.0  ;;  %v1289_v35 = vmax.f32 %v1225_v37, 0.0  ;;  %v1230_v15 = vadd.f32 %v3139_v29, %v1164_v47  ;;  %v1262_v36 = vadd.f32 %v3139_v29, %v1196_v56 }
 0x1d4   : > { %v1351_v28 = vpack.c.bf16 %v1293_v25, %v1292_v4  ;;  %v1263_v27 = vadd.f32 %v3139_v29, %v1197_v52  ;;  %v1169_v59 = vmul.f32 %v3132_v21, %v1103_v5  ;;  %v1234_v34 = vadd.f32 %v3139_v29, %v1168_v22 }
 0x1d5   : > { %v1349_v41 = vpack.c.bf16 %v1289_v35, %v1288_v46  ;;  %v1294_v19 = vmax.f32 %v1230_v15, 0.0  ;;  %v1326_v39 = vmax.f32 %v1262_v36, 0.0  ;;  %v2376_v46 = vld [vmem:[%s3580_s3 + $0x18] sm:$0xff]  ;;  %v1202_v56 = vmul.f32 %v3132_v21, %v1136_v3  ;;  %v1140_v3 = vld [vmem:[%s3129_s25 + $0x1b0] sm:$0xff] }
 0x1d6   : > { %v1327_v40 = vmax.f32 %v1263_v27, 0.0  ;;  %v1235_v23 = vadd.f32 %v3139_v29, %v1169_v59  ;;  %v1203_v52 = vmul.f32 %v3132_v21, %v1137_v42  ;;  %v1141_v42 = vld [vmem:[%s3129_s25 + $0x1b8] sm:$0xff] }
 0x1d7   : > { %1450 = vmatpush.bf16.msra.mxu0 %v2366_v8  ;;  %2393 = vmatpush.bf16.msra.mxu2 %v2366_v8  ;;  %v1094_v8 = vld [vmem:[%s3129_s25 + $0x40] sm:$0xff]  ;;  %v1268_v27 = vadd.f32 %v3139_v29, %v1202_v56 }
 0x1d8   : > { %v1160_v43 = vmul.f32 %v3132_v21, %v1094_v8  ;;  %v1368_v44 = vpack.c.bf16 %v1327_v40, %v1326_v39  ;;  %v1133_v8 = vld [vmem:[%s3129_s25 + $0x178] sm:$0xff]  ;;  %v1299_v4 = vmax.f32 %v1235_v23, 0.0 }
 0x1da   : > { %v1226_v12 = vadd.f32 %v3139_v29, %v1160_v43 }
 0x1db   : > { %1451 = vmatpush.bf16.msra.mxu0 %v2365_v6  ;;  %2394 = vmatpush.bf16.msra.mxu2 %v2365_v6  ;;  %v1161_v6 = vmul.f32 %v3132_v21, %v1095_v33  ;;  %v1166_v33 = vmul.f32 %v3132_v21, %v1100_v61 }
 0x1dc   : > { %v1290_v31 = vmax.f32 %v1226_v12, 0.0 }
 0x1dd   : > { %v1227_v10 = vadd.f32 %v3139_v29, %v1161_v6  ;;  %v1199_v6 = vmul.f32 %v3132_v21, %v1133_v8 }
 0x1de   : > { %1452 = vmatmul.bf16.vlgmr.msra.gmra.mxu0 %v1346_v16  ;;  %1532 = vmatmul.bf16.vlgmr.msra.gmra.mxu2 %v1362_v7  ;;  %v1192_v16 = vmul.f32 %v3132_v21, %v1126_v17  ;;  %v1193_v7 = vmul.f32 %v3132_v21, %v1127_v9  ;;  %v2375_v17 = vld [vmem:[%s3580_s3 + $0x10] sm:$0xff] }
 0x1df   : > { %v1291_v11 = vmax.f32 %v1227_v10, 0.0 }
 0x1e0   : > { %v1258_v50 = vadd.f32 %v3139_v29, %v1192_v16  ;;  %v1259_v53 = vadd.f32 %v3139_v29, %v1193_v7  ;;  %v2374_v16 = vld [vmem:[%s3580_s3 + $0x8] sm:$0xff]  ;;  %v1232_v7 = vadd.f32 %v3139_v29, %v1166_v33 }
 0x1e1   : > { %v1350_v26 = vpack.c.bf16 %v1291_v11, %v1290_v31 }
 0x1e2   : > { %v1322_v63 = vmax.f32 %v1258_v50, 0.0  ;;  %v1323_v54 = vmax.f32 %v1259_v53, 0.0  ;;  %v1265_v50 = vadd.f32 %v3139_v29, %v1199_v6  ;;  %v2373_v53 = vld [vmem:[%s3580_s3] sm:$0xff]  ;;  %v1296_v31 = vmax.f32 %v1232_v7, 0.0  ;;  %v1107_v6 = vld [vmem:[%s3129_s25 + $0xa8] sm:$0xff] }
 0x1e3   : > { %v1138_v7 = vld [vmem:[%s3129_s25 + $0x1a0] sm:$0xff] }
 0x1e4   : > { %v1366_v2 = vpack.c.bf16 %v1323_v54, %v1322_v63  ;;  %v1329_v54 = vmax.f32 %v1265_v50, 0.0 }
 0x1ee   : > { %1457 = vmatmul.bf16.gmra.mxu0 %v1347_v45  ;;  %1537 = vmatmul.bf16.gmra.mxu2 %v1363_v48  ;;  %v1194_v45 = vmul.f32 %v3132_v21, %v1128_v57  ;;  %v1195_v48 = vmul.f32 %v3132_v21, %v1129_v58  ;;  %v1134_v57 = vld [vmem:[%s3129_s25 + $0x180] sm:$0xff]  ;;  %v1135_v58 = vld [vmem:[%s3129_s25 + $0x188] sm:$0xff] }
 0x1f0   : > { %v1260_v13 = vadd.f32 %v3139_v29, %v1194_v45  ;;  %v1261_v18 = vadd.f32 %v3139_v29, %v1195_v48  ;;  %v1200_v45 = vmul.f32 %v3132_v21, %v1134_v57  ;;  %v1201_v48 = vmul.f32 %v3132_v21, %v1135_v58 }
 0x1f2   : > { %v1324_v14 = vmax.f32 %v1260_v13, 0.0  ;;  %v1325_v0 = vmax.f32 %v1261_v18, 0.0  ;;  %v1266_v62 = vadd.f32 %v3139_v29, %v1200_v45  ;;  %v1267_v13 = vadd.f32 %v3139_v29, %v1201_v48 }
 0x1f3   : > { %v1298_v18 = vmax.f32 %v1234_v34, 0.0 }
 0x1f4   : > { %v1367_v1 = vpack.c.bf16 %v1325_v0, %v1324_v14  ;;  %v1330_v25 = vmax.f32 %v1266_v62, 0.0  ;;  %v1331_v14 = vmax.f32 %v1267_v13, 0.0 }
 0x1f5   : > { %v1354_v0 = vpack.c.bf16 %v1299_v4, %v1298_v18 }
 0x1fe   : > { %1462 = vmatmul.bf16.gmra.mxu0 %v1348_v20  ;;  %1542 = vmatmul.bf16.gmra.mxu2 %v1364_v51  ;;  %v2379_v20 = vld [vmem:[%s3580_s3 + $0x30] sm:$0xff]  ;;  %v1165_v51 = vmul.f32 %v3132_v21, %v1099_v38  ;;  %v1105_v38 = vld [vmem:[%s3129_s25 + $0x98] sm:$0xff] }
 0x1ff   : > { %1776 = vmatpush.bf16.msra.mxu1 %v2379_v20  ;;  %2396 = vmatpush.bf16.msra.mxu3 %v2379_v20  ;;  %v3284_v20 = vld [vmem:[%s3581_s4 + $0x3] ss:$0 sm:$0xff] }
 0x200   : > { %v1231_v49 = vadd.f32 %v3139_v29, %v1165_v51  ;;  %v1171_v51 = vmul.f32 %v3132_v21, %v1105_v38 }
 0x202   : > { %v1295_v37 = vmax.f32 %v1231_v49, 0.0  ;;  %v1237_v36 = vadd.f32 %v3139_v29, %v1171_v51 }
 0x203   : > { %1777 = vmatpush.bf16.msra.mxu1 %v2378_v30  ;;  %2397 = vmatpush.bf16.msra.mxu3 %v2378_v30 }
 0x204   : > { %v1352_v35 = vpack.c.bf16 %v1295_v37, %v1294_v19 }
 0x207   : > { %1778 = vmatpush.bf16.msra.mxu1 %v2377_v60  ;;  %2398 = vmatpush.bf16.msra.mxu3 %v2377_v60  ;;  %v1269_v60 = vadd.f32 %v3139_v29, %v1203_v52 }
 0x209   : > { %v1333_v61 = vmax.f32 %v1269_v60, 0.0 }
 0x20b   : > { %1779 = vmatpush.bf16.msra.mxu1 %v2376_v46  ;;  %2399 = vmatpush.bf16.msra.mxu3 %v2376_v46 }
 0x20e   : > { %1467 = vmatmul.bf16.gmra.mxu0 %v1349_v41  ;;  %1547 = vmatmul.bf16.gmra.mxu2 %v1365_v55  ;;  %v1101_v41 = vld [vmem:[%s3129_s25 + $0x78] sm:$0xff]  ;;  %v1132_v55 = vld [vmem:[%s3129_s25 + $0x170] sm:$0xff] }
 0x20f   : > { %v1167_v9 = vmul.f32 %v3132_v21, %v1101_v41  ;;  %v1198_v43 = vmul.f32 %v3132_v21, %v1132_v55  ;;  %1780 = vmatpush.bf16.msra.mxu1 %v2375_v17  ;;  %2400 = vmatpush.bf16.msra.mxu3 %v2375_v17 }
 0x211   : > { %v1233_v12 = vadd.f32 %v3139_v29, %v1167_v9  ;;  %v1264_v10 = vadd.f32 %v3139_v29, %v1198_v43  ;;  %v1106_v43 = vld [vmem:[%s3129_s25 + $0xa0] sm:$0xff] }
 0x213   : > { %1781 = vmatpush.bf16.msra.mxu1 %v2374_v16  ;;  %2401 = vmatpush.bf16.msra.mxu3 %v2374_v16  ;;  %v1297_v11 = vmax.f32 %v1233_v12, 0.0  ;;  %v1328_v63 = vmax.f32 %v1264_v10, 0.0  ;;  %v1139_v12 = vld [vmem:[%s3129_s25 + $0x1a8] sm:$0xff] }
 0x217   : > { %1782 = vmatpush.bf16.msra.mxu1 %v2373_v53  ;;  %2402 = vmatpush.bf16.msra.mxu3 %v2373_v53  ;;  %v1172_v53 = vmul.f32 %v3132_v21, %v1106_v43 }
 0x219   : > { %v1238_v32 = vadd.f32 %v3139_v29, %v1172_v53  ;;  %v1143_v53 = vld [vmem:[%s3129_s25 + $0x1c8] sm:$0xff] }
 0x21b   : > { %v1302_v48 = vmax.f32 %v1238_v32, 0.0  ;;  %v1209_v32 = vmul.f32 %v3132_v21, %v1143_v53  ;;  %v1115_v53 = vld [vmem:[%s3129_s25 + $0xe8] sm:$0xff] }
 0x21e   : > { %1472 = vmatmul.bf16.gmra.mxu0 %v1350_v26  ;;  %1552 = vmatmul.bf16.gmra.mxu2 %v1366_v2  ;;  %v1353_v26 = vpack.c.bf16 %v1297_v11, %v1296_v31  ;;  %v1369_v2 = vpack.c.bf16 %v1329_v54, %v1328_v63  ;;  %v1173_v31 = vmul.f32 %v3132_v21, %v1107_v6 }
 0x21f   : > { %v1204_v63 = vmul.f32 %v3132_v21, %v1138_v7  ;;  %v1205_v54 = vmul.f32 %v3132_v21, %v1139_v12  ;;  %v1110_v7 = vld [vmem:[%s3129_s25 + $0xc0] sm:$0xff]  ;;  %v1111_v12 = vld [vmem:[%s3129_s25 + $0xc8] sm:$0xff] }
 0x220   : > { %v1239_v5 = vadd.f32 %v3139_v29, %v1173_v31 }
 0x221   : > { %v1270_v57 = vadd.f32 %v3139_v29, %v1204_v63  ;;  %v1271_v58 = vadd.f32 %v3139_v29, %v1205_v54  ;;  %v1176_v63 = vmul.f32 %v3132_v21, %v1110_v7  ;;  %v1177_v54 = vmul.f32 %v3132_v21, %v1111_v12 }
 0x222   : > { %v1303_v23 = vmax.f32 %v1239_v5, 0.0 }
 0x223   : > { %v1334_v62 = vmax.f32 %v1270_v57, 0.0  ;;  %v1335_v13 = vmax.f32 %v1271_v58, 0.0  ;;  %v1242_v58 = vadd.f32 %v3139_v29, %v1176_v63  ;;  %v1147_v63 = vld [vmem:[%s3129_s25 + $0x1e8] sm:$0xff] }
 0x22e   : > { %1477 = vmatmul.bf16.gmra.mxu0 %v1351_v28  ;;  %1557 = vmatmul.bf16.gmra.mxu2 %v1367_v1  ;;  %v1370_v28 = vpack.c.bf16 %v1331_v14, %v1330_v25  ;;  %v1104_v1 = vld [vmem:[%s3129_s25 + $0x90] sm:$0xff] }
 0x22f   : > { %v1170_v47 = vmul.f32 %v3132_v21, %v1104_v1  ;;  %v1108_v1 = vld [vmem:[%s3129_s25 + $0xb0] sm:$0xff] }
 0x230   : > { %v1174_v56 = vmul.f32 %v3132_v21, %v1108_v1 }
 0x231   : > { %v1236_v49 = vadd.f32 %v3139_v29, %v1170_v47 }
 0x232   : > { %v1240_v60 = vadd.f32 %v3139_v29, %v1174_v56  ;;  %v1145_v56 = vld [vmem:[%s3129_s25 + $0x1d8] sm:$0xff] }
 0x233   : > { %v1300_v40 = vmax.f32 %v1236_v49, 0.0  ;;  %v1207_v49 = vmul.f32 %v3132_v21, %v1141_v42  ;;  %v1113_v42 = vld [vmem:[%s3129_s25 + $0xd8] sm:$0xff] }
 0x23e   : > { %1482 = vmatmul.bf16.gmra.mxu0 %v1352_v35  ;;  %1562 = vmatmul.bf16.gmra.mxu2 %v1368_v44  ;;  %v1301_v35 = vmax.f32 %v1237_v36, 0.0  ;;  %v1332_v44 = vmax.f32 %v1268_v27, 0.0 }
 0x240   : > { %v1355_v17 = vpack.c.bf16 %v1301_v35, %v1300_v40  ;;  %v1371_v9 = vpack.c.bf16 %v1333_v61, %v1332_v44  ;;  %v1304_v44 = vmax.f32 %v1240_v60, 0.0  ;;  %v1211_v60 = vmul.f32 %v3132_v21, %v1145_v56  ;;  %v1117_v56 = vld [vmem:[%s3129_s25 + $0xf8] sm:$0xff] }
 0x24e   : > { %1487 = vmatmul.bf16.gmra.mxu0 %v1353_v26  ;;  %1567 = vmatmul.bf16.gmra.mxu2 %v1369_v2 }
 0x25b   : > { %v1453_v24 = vpop.f32.mrf.mxu0 }
 0x25c   : > { %v1454_v30 = vadd.f32 %v3284_v20, %v1453_v24  ;;  %v1109_v24 = vld [vmem:[%s3129_s25 + $0xb8] sm:$0xff] }
 0x25d   : > { %v1175_v52 = vmul.f32 %v3132_v21, %v1109_v24 }
 0x25e   : > { %1492 = vmatmul.bf16.gmra.mxu0 %v1354_v0  ;;  %1572 = vmatmul.bf16.gmra.mxu2 %v1370_v28  ;;  %v1613_v37 = vmax.f32 %v1454_v30, 0.0  ;;  %v1356_v0 = vpack.c.bf16 %v1303_v23, %v1302_v48  ;;  %v1372_v28 = vpack.c.bf16 %v1335_v13, %v1334_v62  ;;  %v1306_v62 = vmax.f32 %v1242_v58, 0.0 }
 0x25f   : > { %v1213_v58 = vmul.f32 %v3132_v21, %v1147_v63 }
 0x261   : > { %v1533_v15 = vpop.f32.mrf.mxu2 }
 0x262   : > { %v1534_v41 = vadd.f32 %v3284_v20, %v1533_v15  ;;  %v1206_v15 = vmul.f32 %v3132_v21, %v1140_v3  ;;  %v1112_v3 = vld [vmem:[%s3129_s25 + $0xd0] sm:$0xff] }
 0x263   : > { %v1455_v19 = vpop.f32.mrf.mxu0 }
 0x264   : > { %v1456_v39 = vadd.f32 %v3284_v20, %v1455_v19  ;;  %v1645_v10 = vmax.f32 %v1534_v41, 0.0  ;;  %v1241_v19 = vadd.f32 %v3139_v29, %v1175_v52 }
 0x266   : > { %v1614_v46 = vmax.f32 %v1456_v39, 0.0  ;;  %v1273_v39 = vadd.f32 %v3139_v29, %v1207_v49  ;;  %v1305_v41 = vmax.f32 %v1241_v19, 0.0  ;;  %v1179_v49 = vmul.f32 %v3132_v21, %v1113_v42 }
 0x268   : > { %v1677_v55 = vpack.c.bf16 %v1614_v46, %v1613_v37  ;;  %v1272_v37 = vadd.f32 %v3139_v29, %v1206_v15  ;;  %v1357_v6 = vpack.c.bf16 %v1305_v41, %v1304_v44  ;;  %v1178_v15 = vmul.f32 %v3132_v21, %v1112_v3 }
 0x269   : > { %v1535_v8 = vpop.f32.mrf.mxu2 }
 0x26a   : > { %v1536_v33 = vadd.f32 %v3284_v20, %v1535_v8  ;;  %1783 = vmatmul.bf16.vlgmr.msra.gmra.mxu1 %v1677_v55  ;;  %v1336_v55 = vmax.f32 %v1272_v37, 0.0  ;;  %v1337_v8 = vmax.f32 %v1273_v39, 0.0  ;;  %v1244_v39 = vadd.f32 %v3139_v29, %v1178_v15  ;;  %v1149_v15 = vld [vmem:[%s3129_s25 + $0x1f8] sm:$0xff] }
 0x26b   : > { %v1458_v16 = vpop.f32.mrf.mxu0 }
 0x26c   : > { %v1646_v50 = vmax.f32 %v1536_v33, 0.0  ;;  %v1459_v26 = vadd.f32 %v3284_v20, %v1458_v16  ;;  %v1373_v16 = vpack.c.bf16 %v1337_v8, %v1336_v55  ;;  %v1308_v55 = vmax.f32 %v1244_v39, 0.0 }
 0x26d   : > { %v1215_v39 = vmul.f32 %v3132_v21, %v1149_v15 }
 0x26e   : > { %1497 = vmatmul.bf16.gmra.mxu0 %v1355_v17  ;;  %1577 = vmatmul.bf16.gmra.mxu2 %v1371_v9  ;;  %v1693_v11 = vpack.c.bf16 %v1646_v50, %v1645_v10  ;;  %v1615_v59 = vmax.f32 %v1459_v26, 0.0  ;;  %v1142_v50 = vld [vmem:[%s3129_s25 + $0x1c0] sm:$0xff] }
 0x270   : > { %1863 = vmatmul.bf16.vlgmr.msra.gmra.mxu3 %v1693_v11 }
 0x271   : > { %v1538_v2 = vpop.f32.mrf.mxu2 }
 0x272   : > { %v1539_v18 = vadd.f32 %v3284_v20, %v1538_v2  ;;  %v1208_v2 = vmul.f32 %v3132_v21, %v1142_v50  ;;  %v1114_v50 = vld [vmem:[%s3129_s25 + $0xe0] sm:$0xff] }
 0x273   : > { %v1460_v22 = vpop.f32.mrf.mxu0 }
 0x274   : > { %v1461_v45 = vadd.f32 %v3284_v20, %v1460_v22  ;;  %v1647_v47 = vmax.f32 %v1539_v18, 0.0  ;;  %v1243_v22 = vadd.f32 %v3139_v29, %v1177_v54 }
 0x276   : > { %v1616_v34 = vmax.f32 %v1461_v45, 0.0  ;;  %v1275_v45 = vadd.f32 %v3139_v29, %v1209_v32  ;;  %v1307_v18 = vmax.f32 %v1243_v22, 0.0  ;;  %v1181_v32 = vmul.f32 %v3132_v21, %v1115_v53 }
 0x278   : > { %v1678_v4 = vpack.c.bf16 %v1616_v34, %v1615_v59  ;;  %v1274_v59 = vadd.f32 %v3139_v29, %v1208_v2  ;;  %v1358_v24 = vpack.c.bf16 %v1307_v18, %v1306_v62  ;;  %v1180_v2 = vmul.f32 %v3132_v21, %v1114_v50 }
 0x279   : > { %v1540_v25 = vpop.f32.mrf.mxu2 }
 0x27a   : > { %v1541_v14 = vadd.f32 %v3284_v20, %v1540_v25  ;;  %1788 = vmatmul.bf16.gmra.mxu1 %v1678_v4  ;;  %v1338_v4 = vmax.f32 %v1274_v59, 0.0  ;;  %v1339_v25 = vmax.f32 %v1275_v45, 0.0  ;;  %v1246_v45 = vadd.f32 %v3139_v29, %v1180_v2 }
 0x27b   : > { %v1463_v38 = vpop.f32.mrf.mxu0 }
 0x27c   : > { %v1648_v51 = vmax.f32 %v1541_v14, 0.0  ;;  %v1464_v36 = vadd.f32 %v3284_v20, %v1463_v38  ;;  %v1374_v38 = vpack.c.bf16 %v1339_v25, %v1338_v4  ;;  %v1310_v4 = vmax.f32 %v1246_v45, 0.0 }
 0x27e   : > { %1502 = vmatmul.bf16.gmra.mxu0 %v1356_v0  ;;  %1582 = vmatmul.bf16.gmra.mxu2 %v1372_v28  ;;  %v1694_v30 = vpack.c.bf16 %v1648_v51, %v1647_v47  ;;  %v1617_v46 = vmax.f32 %v1464_v36, 0.0  ;;  %v1144_v51 = vld [vmem:[%s3129_s25 + $0x1d0] sm:$0xff] }
 0x280   : > { %1868 = vmatmul.bf16.gmra.mxu3 %v1694_v30 }
 0x281   : > { %v1543_v27 = vpop.f32.mrf.mxu2 }
 0x282   : > { %v1544_v33 = vadd.f32 %v3284_v20, %v1543_v27  ;;  %v1210_v27 = vmul.f32 %v3132_v21, %v1144_v51  ;;  %v1116_v51 = vld [vmem:[%s3129_s25 + $0xf0] sm:$0xff] }
 0x283   : > { %v1465_v40 = vpop.f32.mrf.mxu0 }
 0x284   : > { %v1466_v35 = vadd.f32 %v3284_v20, %v1465_v40  ;;  %v1649_v31 = vmax.f32 %v1544_v33, 0.0  ;;  %v1245_v40 = vadd.f32 %v3139_v29, %v1179_v49 }
 0x286   : > { %v1618_v61 = vmax.f32 %v1466_v35, 0.0  ;;  %v1277_v35 = vadd.f32 %v3139_v29, %v1211_v60  ;;  %v1309_v33 = vmax.f32 %v1245_v40, 0.0  ;;  %v1183_v60 = vmul.f32 %v3132_v21, %v1117_v56 }
 0x288   : > { %v1679_v17 = vpack.c.bf16 %v1618_v61, %v1617_v46  ;;  %v1276_v46 = vadd.f32 %v3139_v29, %v1210_v27  ;;  %v1359_v12 = vpack.c.bf16 %v1309_v33, %v1308_v55  ;;  %v1182_v27 = vmul.f32 %v3132_v21, %v1116_v51 }
 0x289   : > { %v1545_v9 = vpop.f32.mrf.mxu2 }
 0x28a   : > { %v1546_v43 = vadd.f32 %v3284_v20, %v1545_v9  ;;  %1793 = vmatmul.bf16.gmra.mxu1 %v1679_v17  ;;  %v1340_v17 = vmax.f32 %v1276_v46, 0.0  ;;  %v1341_v9 = vmax.f32 %v1277_v35, 0.0  ;;  %v1248_v35 = vadd.f32 %v3139_v29, %v1182_v27 }
 0x28b   : > { %v1468_v10 = vpop.f32.mrf.mxu0 }
 0x28c   : > { %v1650_v11 = vmax.f32 %v1546_v43, 0.0  ;;  %v1469_v5 = vadd.f32 %v3284_v20, %v1468_v10  ;;  %v1375_v10 = vpack.c.bf16 %v1341_v9, %v1340_v17  ;;  %v1312_v17 = vmax.f32 %v1248_v35, 0.0 }
 0x28e   : > { %1507 = vmatmul.bf16.gmra.mxu0 %v1357_v6  ;;  %1587 = vmatmul.bf16.gmra.mxu2 %v1373_v16  ;;  %v1695_v26 = vpack.c.bf16 %v1650_v11, %v1649_v31  ;;  %v1619_v34 = vmax.f32 %v1469_v5, 0.0  ;;  %v1146_v11 = vld [vmem:[%s3129_s25 + $0x1e0] sm:$0xff] }
 0x290   : > { %1873 = vmatmul.bf16.gmra.mxu3 %v1695_v26 }
 0x291   : > { %v1548_v57 = vpop.f32.mrf.mxu2 }
 0x292   : > { %v1549_v14 = vadd.f32 %v3284_v20, %v1548_v57  ;;  %v1212_v57 = vmul.f32 %v3132_v21, %v1146_v11 }
 0x293   : > { %v1470_v48 = vpop.f32.mrf.mxu0 }
 0x294   : > { %v1471_v23 = vadd.f32 %v3284_v20, %v1470_v48  ;;  %v1651_v52 = vmax.f32 %v1549_v14, 0.0  ;;  %v1247_v48 = vadd.f32 %v3139_v29, %v1181_v32 }
 0x296   : > { %v1620_v13 = vmax.f32 %v1471_v23, 0.0  ;;  %v1279_v23 = vadd.f32 %v3139_v29, %v1213_v58  ;;  %v1311_v14 = vmax.f32 %v1247_v48, 0.0 }
 0x298   : > { %v1680_v0 = vpack.c.bf16 %v1620_v13, %v1619_v34  ;;  %v1278_v34 = vadd.f32 %v3139_v29, %v1212_v57  ;;  %v1360_v42 = vpack.c.bf16 %v1311_v14, %v1310_v4 }
 0x299   : > { %v1550_v28 = vpop.f32.mrf.mxu2 }
 0x29a   : > { %v1551_v1 = vadd.f32 %v3284_v20, %v1550_v28  ;;  %1798 = vmatmul.bf16.gmra.mxu1 %v1680_v0  ;;  %v1342_v0 = vmax.f32 %v1278_v34, 0.0  ;;  %v1343_v28 = vmax.f32 %v1279_v23, 0.0 }
 0x29b   : > { %v1473_v47 = vpop.f32.mrf.mxu0 }
 0x29c   : > { %v1652_v30 = vmax.f32 %v1551_v1, 0.0  ;;  %v1474_v19 = vadd.f32 %v3284_v20, %v1473_v47  ;;  %v1376_v47 = vpack.c.bf16 %v1343_v28, %v1342_v0  ;;  %v3402_v0 = vld [vmem:[%s3581_s4 + $0x4] ss:$0 sm:$0xff] }
 0x29e   : > { %1512 = vmatmul.bf16.gmra.mxu0 %v1358_v24  ;;  %1592 = vmatmul.bf16.gmra.mxu2 %v1374_v38  ;;  %v1696_v36 = vpack.c.bf16 %v1652_v30, %v1651_v52  ;;  %v1621_v61 = vmax.f32 %v1474_v19, 0.0  ;;  %v1148_v30 = vld [vmem:[%s3129_s25 + $0x1f0] sm:$0xff] }
 0x2a0   : > { %1878 = vmatmul.bf16.gmra.mxu3 %v1696_v36 }
 0x2a1   : > { %v1553_v37 = vpop.f32.mrf.mxu2 }
 0x2a2   : > { %v1554_v43 = vadd.f32 %v3284_v20, %v1553_v37  ;;  %v1214_v37 = vmul.f32 %v3132_v21, %v1148_v30 }
 0x2a3   : > { %v1475_v44 = vpop.f32.mrf.mxu0 }
 0x2a4   : > { %v1476_v41 = vadd.f32 %v3284_v20, %v1475_v44  ;;  %v1653_v54 = vmax.f32 %v1554_v43, 0.0  ;;  %v1249_v44 = vadd.f32 %v3139_v29, %v1183_v60 }
 0x2a6   : > { %v1622_v8 = vmax.f32 %v1476_v41, 0.0  ;;  %v1281_v41 = vadd.f32 %v3139_v29, %v1215_v39  ;;  %v1313_v43 = vmax.f32 %v1249_v44, 0.0 }
 0x2a8   : > { %v1681_v6 = vpack.c.bf16 %v1622_v8, %v1621_v61  ;;  %v1280_v61 = vadd.f32 %v3139_v29, %v1214_v37  ;;  %v1361_v50 = vpack.c.bf16 %v1313_v43, %v1312_v17 }
 0x2a9   : > { %v1555_v16 = vpop.f32.mrf.mxu2 }
 0x2aa   : > { %v1556_v7 = vadd.f32 %v3284_v20, %v1555_v16  ;;  %1803 = vmatmul.bf16.gmra.mxu1 %v1681_v6  ;;  %v1344_v21 = vmax.f32 %v1280_v61, 0.0  ;;  %v1345_v6 = vmax.f32 %v1281_v41, 0.0 }
 0x2ab   : > { %v1478_v31 = vpop.f32.mrf.mxu0 }
 0x2ac   : > { %v1654_v26 = vmax.f32 %v1556_v7, 0.0  ;;  %v1479_v22 = vadd.f32 %v3284_v20, %v1478_v31  ;;  %v1377_v53 = vpack.c.bf16 %v1345_v6, %v1344_v21 }
 0x2ae   : > { %1517 = vmatmul.bf16.gmra.mxu0 %v1359_v12  ;;  %1597 = vmatmul.bf16.gmra.mxu2 %v1375_v10  ;;  %v1697_v5 = vpack.c.bf16 %v1654_v26, %v1653_v54  ;;  %v1623_v13 = vmax.f32 %v1479_v22, 0.0 }
 0x2b0   : > { %1883 = vmatmul.bf16.gmra.mxu3 %v1697_v5 }
 0x2b1   : > { %v1558_v59 = vpop.f32.mrf.mxu2 }
 0x2b2   : > { %v1559_v1 = vadd.f32 %v3284_v20, %v1558_v59 }
 0x2b3   : > { %v1480_v62 = vpop.f32.mrf.mxu0 }
 0x2b4   : > { %v1481_v18 = vadd.f32 %v3284_v20, %v1480_v62  ;;  %v1655_v49 = vmax.f32 %v1559_v1, 0.0 }
 0x2b6   : > { %v1624_v25 = vmax.f32 %v1481_v18, 0.0 }
 0x2b8   : > { %v1682_v24 = vpack.c.bf16 %v1624_v25, %v1623_v13 }
 0x2b9   : > { %v1560_v38 = vpop.f32.mrf.mxu2 }
 0x2ba   : > { %v1561_v3 = vadd.f32 %v3284_v20, %v1560_v38  ;;  %1808 = vmatmul.bf16.gmra.mxu1 %v1682_v24 }
 0x2bb   : > { %v1483_v52 = vpop.f32.mrf.mxu0 }
 0x2bc   : > { %v1656_v36 = vmax.f32 %v1561_v3, 0.0  ;;  %v1484_v40 = vadd.f32 %v3284_v20, %v1483_v52 }
 0x2be   : > { %1522 = vmatmul.bf16.gmra.mxu0 %v1360_v42  ;;  %1602 = vmatmul.bf16.gmra.mxu2 %v1376_v47  ;;  %v1698_v19 = vpack.c.bf16 %v1656_v36, %v1655_v49  ;;  %v1625_v8 = vmax.f32 %v1484_v40, 0.0 }
 0x2c0   : > { %1888 = vmatmul.bf16.gmra.mxu3 %v1698_v19 }
 0x2c1   : > { %v1563_v46 = vpop.f32.mrf.mxu2 }
 0x2c2   : > { %v1564_v16 = vadd.f32 %v3284_v20, %v1563_v46 }
 0x2c3   : > { %v1485_v55 = vpop.f32.mrf.mxu0 }
 0x2c4   : > { %v1486_v33 = vadd.f32 %v3284_v20, %v1485_v55  ;;  %v1657_v29 = vmax.f32 %v1564_v16, 0.0 }
 0x2c6   : > { %v1626_v9 = vmax.f32 %v1486_v33, 0.0 }
 0x2c8   : > { %v1683_v7 = vpack.c.bf16 %v1626_v9, %v1625_v8 }
 0x2c9   : > { %v1565_v12 = vpop.f32.mrf.mxu2 }
 0x2ca   : > { %v1566_v10 = vadd.f32 %v3284_v20, %v1565_v12  ;;  %1813 = vmatmul.bf16.gmra.mxu1 %v1683_v7 }
 0x2cb   : > { %v1488_v31 = vpop.f32.mrf.mxu0 }
 0x2cc   : > { %v1658_v11 = vmax.f32 %v1566_v10, 0.0  ;;  %v1489_v54 = vadd.f32 %v3284_v20, %v1488_v31 }
 0x2ce   : > { %1527 = vmatmul.bf16.gmra.mxu0 %v1361_v50  ;;  %1607 = vmatmul.bf16.gmra.mxu2 %v1377_v53  ;;  %v1699_v63 = vpack.c.bf16 %v1658_v11, %v1657_v29  ;;  %v1627_v32 = vmax.f32 %v1489_v54, 0.0 }
 0x2d0   : > { %1893 = vmatmul.bf16.gmra.mxu3 %v1699_v63 }
 0x2d1   : > { %v1568_v26 = vpop.f32.mrf.mxu2 }
 0x2d2   : > { %v1569_v58 = vadd.f32 %v3284_v20, %v1568_v26 }
 0x2d3   : > { %v1490_v2 = vpop.f32.mrf.mxu0 }
 0x2d4   : > { %v1491_v5 = vadd.f32 %v3284_v20, %v1490_v2  ;;  %v1659_v34 = vmax.f32 %v1569_v58, 0.0 }
 0x2d6   : > { %v1628_v57 = vmax.f32 %v1491_v5, 0.0 }
 0x2d8   : > { %v1684_v22 = vpack.c.bf16 %v1628_v57, %v1627_v32 }
 0x2d9   : > { %v1570_v59 = vpop.f32.mrf.mxu2 }
 0x2da   : > { %v1571_v45 = vadd.f32 %v3284_v20, %v1570_v59  ;;  %1818 = vmatmul.bf16.gmra.mxu1 %v1684_v22 }
 0x2db   : > { %v1493_v48 = vpop.f32.mrf.mxu0 }
 0x2dc   : > { %v1660_v23 = vmax.f32 %v1571_v45, 0.0  ;;  %v1494_v13 = vadd.f32 %v3284_v20, %v1493_v48 }
 0x2de   : > { %v1700_v62 = vpack.c.bf16 %v1660_v23, %v1659_v34  ;;  %v1629_v25 = vmax.f32 %v1494_v13, 0.0 }
 0x2e0   : > { %1898 = vmatmul.bf16.gmra.mxu3 %v1700_v62 }
 0x2e1   : > { %v1573_v18 = vpop.f32.mrf.mxu2 }
 0x2e2   : > { %v1574_v24 = vadd.f32 %v3284_v20, %v1573_v18 }
 0x2e3   : > { %v1495_v4 = vpop.f32.mrf.mxu0 }
 0x2e4   : > { %v1496_v14 = vadd.f32 %v3284_v20, %v1495_v4  ;;  %v1661_v56 = vmax.f32 %v1574_v24, 0.0 }
 0x2e6   : > { %v1630_v28 = vmax.f32 %v1496_v14, 0.0 }
 0x2e7   : > { %v1784_v1 = vpop.f32.mrf.mxu1 }
 0x2e8   : > { %v1785_v38 = vadd.f32 %v3402_v0, %v1784_v1  ;;  %v1685_v3 = vpack.c.bf16 %v1630_v28, %v1629_v25 }
 0x2e9   : > { %v1575_v42 = vpop.f32.mrf.mxu2 }
 0x2ea   : > { %1944 = vst [vmem:[%s2564_s10] sm:$0xff] %v1785_v38  ;;  %v1576_v47 = vadd.f32 %v3284_v20, %v1575_v42  ;;  %1823 = vmatmul.bf16.gmra.mxu1 %v1685_v3 }
 0x2eb   : > { %v1498_v51 = vpop.f32.mrf.mxu0 }
 0x2ec   : > { %v1662_v52 = vmax.f32 %v1576_v47, 0.0  ;;  %v1499_v49 = vadd.f32 %v3284_v20, %v1498_v51 }
 0x2ee   : > { %v1701_v30 = vpack.c.bf16 %v1662_v52, %v1661_v56  ;;  %v1631_v37 = vmax.f32 %v1499_v49, 0.0 }
 0x2ef   : > { %v1786_v15 = vpop.f32.mrf.mxu1 }
 0x2f0   : > { %v1787_v36 = vadd.f32 %v3402_v0, %v1786_v15  ;;  %1903 = vmatmul.bf16.gmra.mxu3 %v1701_v30 }
 0x2f1   : > { %v1578_v27 = vpop.f32.mrf.mxu2 }
 0x2f2   : > { %1945 = vst [vmem:[%s2564_s10 + $0x8] sm:$0xff] %v1787_v36  ;;  %v1579_v44 = vadd.f32 %v3284_v20, %v1578_v27 }
 0x2f3   : > { %v1500_v60 = vpop.f32.mrf.mxu0  ;;  %v1864_v19 = vpop.f32.mrf.mxu3 }
 0x2f4   : > { %v1501_v39 = vadd.f32 %v3284_v20, %v1500_v60  ;;  %v1865_v40 = vadd.f32 %v3402_v0, %v1864_v19  ;;  %v1663_v9 = vmax.f32 %v1579_v44, 0.0 }
 0x2f6   : > { %v1632_v46 = vmax.f32 %v1501_v39, 0.0  ;;  %1976 = vst [vmem:[%s2564_s10 + $0x100] sm:$0xff] %v1865_v40 }
 0x2f7   : > { %v1789_v35 = vpop.f32.mrf.mxu1 }
 0x2f8   : > { %v1790_v61 = vadd.f32 %v3402_v0, %v1789_v35  ;;  %v1686_v41 = vpack.c.bf16 %v1632_v46, %v1631_v37 }
 0x2f9   : > { %v1580_v55 = vpop.f32.mrf.mxu2 }
 0x2fa   : > { %1946 = vst [vmem:[%s2564_s10 + $0x10] sm:$0xff] %v1790_v61  ;;  %v1581_v8 = vadd.f32 %v3284_v20, %v1580_v55  ;;  %1828 = vmatmul.bf16.gmra.mxu1 %v1686_v41 }
 0x2fb   : > { %v1503_v33 = vpop.f32.mrf.mxu0  ;;  %v1866_v17 = vpop.f32.mrf.mxu3 }
 0x2fc   : > { %v1664_v43 = vmax.f32 %v1581_v8, 0.0  ;;  %v1867_v21 = vadd.f32 %v3402_v0, %v1866_v17  ;;  %v1504_v7 = vadd.f32 %v3284_v20, %v1503_v33 }
 0x2fe   : > { %1977 = vst [vmem:[%s2564_s10 + $0x108] sm:$0xff] %v1867_v21  ;;  %v1702_v6 = vpack.c.bf16 %v1664_v43, %v1663_v9  ;;  %v1633_v31 = vmax.f32 %v1504_v7, 0.0 }
 0x2ff   : > { %v1791_v16 = vpop.f32.mrf.mxu1 }
 0x300   : > { %v1792_v12 = vadd.f32 %v3402_v0, %v1791_v16  ;;  %1908 = vmatmul.bf16.gmra.mxu3 %v1702_v6 }
 0x301   : > { %v1583_v10 = vpop.f32.mrf.mxu2 }
 0x302   : > { %1947 = vst [vmem:[%s2564_s10 + $0x18] sm:$0xff] %v1792_v12  ;;  %v1584_v26 = vadd.f32 %v3284_v20, %v1583_v10 }
 0x303   : > { %v1505_v50 = vpop.f32.mrf.mxu0  ;;  %v1869_v53 = vpop.f32.mrf.mxu3 }
 0x304   : > { %v1506_v29 = vadd.f32 %v3284_v20, %v1505_v50  ;;  %v1870_v11 = vadd.f32 %v3402_v0, %v1869_v53  ;;  %v1665_v59 = vmax.f32 %v1584_v26, 0.0 }
 0x306   : > { %v1634_v63 = vmax.f32 %v1506_v29, 0.0  ;;  %1978 = vst [vmem:[%s2564_s10 + $0x110] sm:$0xff] %v1870_v11 }
 0x307   : > { %v1794_v54 = vpop.f32.mrf.mxu1 }
 0x308   : > { %v1795_v2 = vadd.f32 %v3402_v0, %v1794_v54  ;;  %v1687_v32 = vpack.c.bf16 %v1634_v63, %v1633_v31 }
 0x309   : > { %v1585_v5 = vpop.f32.mrf.mxu2 }
 0x30a   : > { %1948 = vst [vmem:[%s2564_s10 + $0x20] sm:$0xff] %v1795_v2  ;;  %v1586_v57 = vadd.f32 %v3284_v20, %v1585_v5  ;;  %1833 = vmatmul.bf16.gmra.mxu1 %v1687_v32 }
 0x30b   : > { %v1508_v58 = vpop.f32.mrf.mxu0  ;;  %v1871_v22 = vpop.f32.mrf.mxu3 }
 0x30c   : > { %v1666_v45 = vmax.f32 %v1586_v57, 0.0  ;;  %v1872_v48 = vadd.f32 %v3402_v0, %v1871_v22  ;;  %v1509_v62 = vadd.f32 %v3284_v20, %v1508_v58 }
 0x30e   : > { %1979 = vst [vmem:[%s2564_s10 + $0x118] sm:$0xff] %v1872_v48  ;;  %v1703_v34 = vpack.c.bf16 %v1666_v45, %v1665_v59  ;;  %v1635_v14 = vmax.f32 %v1509_v62, 0.0 }
 0x30f   : > { %v1796_v23 = vpop.f32.mrf.mxu1 }
 0x310   : > { %v1797_v13 = vadd.f32 %v3402_v0, %v1796_v23  ;;  %1913 = vmatmul.bf16.gmra.mxu3 %v1703_v34 }
 0x311   : > { %v1588_v18 = vpop.f32.mrf.mxu2 }
 0x312   : > { %1949 = vst [vmem:[%s2564_s10 + $0x28] sm:$0xff] %v1797_v13  ;;  %v1589_v3 = vadd.f32 %v3284_v20, %v1588_v18 }
 0x313   : > { %v1510_v4 = vpop.f32.mrf.mxu0  ;;  %v1874_v25 = vpop.f32.mrf.mxu3 }
 0x314   : > { %v1511_v28 = vadd.f32 %v3284_v20, %v1510_v4  ;;  %v1875_v1 = vadd.f32 %v3402_v0, %v1874_v25  ;;  %v1667_v15 = vmax.f32 %v1589_v3, 0.0 }
 0x316   : > { %v1636_v24 = vmax.f32 %v1511_v28, 0.0  ;;  %1980 = vst [vmem:[%s2564_s10 + $0x120] sm:$0xff] %v1875_v1 }
 0x317   : > { %v1799_v38 = vpop.f32.mrf.mxu1 }
 0x318   : > { %v1800_v42 = vadd.f32 %v3402_v0, %v1799_v38  ;;  %v1688_v47 = vpack.c.bf16 %v1636_v24, %v1635_v14 }
 0x319   : > { %v1590_v51 = vpop.f32.mrf.mxu2 }
 0x31a   : > { %1950 = vst [vmem:[%s2564_s10 + $0x30] sm:$0xff] %v1800_v42  ;;  %v1591_v56 = vadd.f32 %v3284_v20, %v1590_v51  ;;  %1838 = vmatmul.bf16.gmra.mxu1 %v1688_v47 }
 0x31b   : > { %v1513_v52 = vpop.f32.mrf.mxu0  ;;  %v1876_v30 = vpop.f32.mrf.mxu3 }
 0x31c   : > { %v1668_v49 = vmax.f32 %v1591_v56, 0.0  ;;  %v1877_v36 = vadd.f32 %v3402_v0, %v1876_v30  ;;  %v1514_v19 = vadd.f32 %v3284_v20, %v1513_v52 }
 0x31e   : > { %1981 = vst [vmem:[%s2564_s10 + $0x128] sm:$0xff] %v1877_v36  ;;  %v1704_v27 = vpack.c.bf16 %v1668_v49, %v1667_v15  ;;  %v1637_v35 = vmax.f32 %v1514_v19, 0.0 }
 0x31f   : > { %v1801_v60 = vpop.f32.mrf.mxu1 }
 0x320   : > { %v1802_v37 = vadd.f32 %v3402_v0, %v1801_v60  ;;  %1918 = vmatmul.bf16.gmra.mxu3 %v1704_v27 }
 0x321   : > { %v1593_v39 = vpop.f32.mrf.mxu2 }
 0x322   : > { %1951 = vst [vmem:[%s2564_s10 + $0x38] sm:$0xff] %v1802_v37  ;;  %v1594_v8 = vadd.f32 %v3284_v20, %v1593_v39 }
 0x323   : > { %v1515_v40 = vpop.f32.mrf.mxu0  ;;  %v1879_v46 = vpop.f32.mrf.mxu3 }
 0x324   : > { %v1516_v44 = vadd.f32 %v3284_v20, %v1515_v40  ;;  %v1880_v61 = vadd.f32 %v3402_v0, %v1879_v46  ;;  %v1669_v16 = vmax.f32 %v1594_v8, 0.0 }
 0x326   : > { %v1638_v41 = vmax.f32 %v1516_v44, 0.0  ;;  %1982 = vst [vmem:[%s2564_s10 + $0x130] sm:$0xff] %v1880_v61 }
 0x327   : > { %v1804_v55 = vpop.f32.mrf.mxu1 }
 0x328   : > { %v1689_v33 = vpack.c.bf16 %v1638_v41, %v1637_v35  ;;  %v1805_v17 = vadd.f32 %v3402_v0, %v1804_v55 }
 0x329   : > { %v1595_v9 = vpop.f32.mrf.mxu2 }
 0x32a   : > { %1952 = vst [vmem:[%s2564_s10 + $0x40] sm:$0xff] %v1805_v17  ;;  %v1596_v43 = vadd.f32 %v3284_v20, %v1595_v9  ;;  %1843 = vmatmul.bf16.gmra.mxu1 %v1689_v33 }
 0x32b   : > { %v1518_v21 = vpop.f32.mrf.mxu0  ;;  %v1881_v6 = vpop.f32.mrf.mxu3 }
 0x32c   : > { %v1670_v7 = vmax.f32 %v1596_v43, 0.0  ;;  %v1882_v12 = vadd.f32 %v3402_v0, %v1881_v6  ;;  %v1519_v53 = vadd.f32 %v3284_v20, %v1518_v21 }
 0x32e   : > { %v1705_v10 = vpack.c.bf16 %v1670_v7, %v1669_v16  ;;  %1983 = vst [vmem:[%s2564_s10 + $0x138] sm:$0xff] %v1882_v12  ;;  %v1639_v54 = vmax.f32 %v1519_v53, 0.0 }
 0x32f   : > { %v1806_v50 = vpop.f32.mrf.mxu1 }
 0x330   : > { %v1807_v31 = vadd.f32 %v3402_v0, %v1806_v50  ;;  %1923 = vmatmul.bf16.gmra.mxu3 %v1705_v10 }
 0x331   : > { %v1598_v29 = vpop.f32.mrf.mxu2 }
 0x332   : > { %1953 = vst [vmem:[%s2564_s10 + $0x48] sm:$0xff] %v1807_v31  ;;  %v1599_v57 = vadd.f32 %v3284_v20, %v1598_v29 }
 0x333   : > { %v1520_v11 = vpop.f32.mrf.mxu0  ;;  %v1884_v63 = vpop.f32.mrf.mxu3 }
 0x334   : > { %v1521_v26 = vadd.f32 %v3284_v20, %v1520_v11  ;;  %v1885_v2 = vadd.f32 %v3402_v0, %v1884_v63  ;;  %v1671_v23 = vmax.f32 %v1599_v57, 0.0 }
 0x336   : > { %v1640_v32 = vmax.f32 %v1521_v26, 0.0  ;;  %1984 = vst [vmem:[%s2564_s10 + $0x140] sm:$0xff] %v1885_v2 }
 0x337   : > { %v1809_v5 = vpop.f32.mrf.mxu1 }
 0x338   : > { %v1690_v58 = vpack.c.bf16 %v1640_v32, %v1639_v54  ;;  %v1810_v22 = vadd.f32 %v3402_v0, %v1809_v5 }
 0x339   : > { %v1600_v59 = vpop.f32.mrf.mxu2 }
 0x33a   : > { %1954 = vst [vmem:[%s2564_s10 + $0x50] sm:$0xff] %v1810_v22  ;;  %v1601_v45 = vadd.f32 %v3284_v20, %v1600_v59  ;;  %1848 = vmatmul.bf16.gmra.mxu1 %v1690_v58 }
 0x33b   : > { %v1523_v48 = vpop.f32.mrf.mxu0  ;;  %v1886_v34 = vpop.f32.mrf.mxu3 }
 0x33c   : > { %v1672_v62 = vmax.f32 %v1601_v45, 0.0  ;;  %v1887_v13 = vadd.f32 %v3402_v0, %v1886_v34  ;;  %v1524_v25 = vadd.f32 %v3284_v20, %v1523_v48 }
 0x33e   : > { %v1706_v18 = vpack.c.bf16 %v1672_v62, %v1671_v23  ;;  %1985 = vst [vmem:[%s2564_s10 + $0x148] sm:$0xff] %v1887_v13  ;;  %v1641_v38 = vmax.f32 %v1524_v25, 0.0 }
 0x33f   : > { %v1811_v4 = vpop.f32.mrf.mxu1 }
 0x340   : > { %v1812_v14 = vadd.f32 %v3402_v0, %v1811_v4  ;;  %1928 = vmatmul.bf16.gmra.mxu3 %v1706_v18 }
 0x341   : > { %v1603_v28 = vpop.f32.mrf.mxu2 }
 0x342   : > { %1955 = vst [vmem:[%s2564_s10 + $0x58] sm:$0xff] %v1812_v14  ;;  %v1604_v56 = vadd.f32 %v3284_v20, %v1603_v28 }
 0x343   : > { %v1525_v1 = vpop.f32.mrf.mxu0  ;;  %v1889_v24 = vpop.f32.mrf.mxu3 }
 0x344   : > { %v1526_v3 = vadd.f32 %v3284_v20, %v1525_v1  ;;  %v1890_v42 = vadd.f32 %v3402_v0, %v1889_v24  ;;  %v1673_v60 = vmax.f32 %v1604_v56, 0.0 }
 0x346   : > { %v1642_v47 = vmax.f32 %v1526_v3, 0.0  ;;  %1986 = vst [vmem:[%s2564_s10 + $0x150] sm:$0xff] %v1890_v42 }
 0x347   : > { %v1814_v51 = vpop.f32.mrf.mxu1 }
 0x348   : > { %v1691_v52 = vpack.c.bf16 %v1642_v47, %v1641_v38  ;;  %v1815_v30 = vadd.f32 %v3402_v0, %v1814_v51 }
 0x349   : > { %v1605_v15 = vpop.f32.mrf.mxu2 }
 0x34a   : > { %1956 = vst [vmem:[%s2564_s10 + $0x60] sm:$0xff] %v1815_v30  ;;  %v1606_v49 = vadd.f32 %v3284_v20, %v1605_v15  ;;  %1853 = vmatmul.bf16.gmra.mxu1 %v1691_v52 }
 0x34b   : > { %v1528_v36 = vpop.f32.mrf.mxu0  ;;  %v1891_v27 = vpop.f32.mrf.mxu3 }
 0x34c   : > { %v1674_v19 = vmax.f32 %v1606_v49, 0.0  ;;  %v1892_v37 = vadd.f32 %v3402_v0, %v1891_v27  ;;  %v1529_v46 = vadd.f32 %v3284_v20, %v1528_v36 }
 0x34e   : > { %v1707_v39 = vpack.c.bf16 %v1674_v19, %v1673_v60  ;;  %1987 = vst [vmem:[%s2564_s10 + $0x158] sm:$0xff] %v1892_v37  ;;  %v1643_v55 = vmax.f32 %v1529_v46, 0.0 }
 0x34f   : > { %v1816_v40 = vpop.f32.mrf.mxu1 }
 0x350   : > { %v1817_v35 = vadd.f32 %v3402_v0, %v1816_v40  ;;  %1933 = vmatmul.bf16.gmra.mxu3 %v1707_v39 }
 0x351   : > { %v1608_v44 = vpop.f32.mrf.mxu2 }
 0x352   : > { %1957 = vst [vmem:[%s2564_s10 + $0x68] sm:$0xff] %v1817_v35  ;;  %v1609_v43 = vadd.f32 %v3284_v20, %v1608_v44 }
 0x353   : > { %v1530_v61 = vpop.f32.mrf.mxu0  ;;  %v1894_v41 = vpop.f32.mrf.mxu3 }
 0x354   : > { %v1531_v8 = vadd.f32 %v3284_v20, %v1530_v61  ;;  %v1895_v33 = vadd.f32 %v3402_v0, %v1894_v41  ;;  %v1675_v10 = vmax.f32 %v1609_v43, 0.0 }
 0x356   : > { %v1644_v17 = vmax.f32 %v1531_v8, 0.0  ;;  %1988 = vst [vmem:[%s2564_s10 + $0x160] sm:$0xff] %v1895_v33 }
 0x357   : > { %v1819_v9 = vpop.f32.mrf.mxu1 }
 0x358   : > { %v1692_v21 = vpack.c.bf16 %v1644_v17, %v1643_v55  ;;  %v1820_v6 = vadd.f32 %v3402_v0, %v1819_v9 }
 0x359   : > { %v1610_v16 = vpop.f32.mrf.mxu2 }
 0x35a   : > { %1958 = vst [vmem:[%s2564_s10 + $0x70] sm:$0xff] %v1820_v6  ;;  %v1611_v7 = vadd.f32 %v3284_v20, %v1610_v16  ;;  %1858 = vmatmul.bf16.gmra.mxu1 %v1692_v21 }
 0x35b   : > { %v1896_v12 = vpop.f32.mrf.mxu3 }
 0x35c   : > { %v1676_v50 = vmax.f32 %v1611_v7, 0.0  ;;  %v1897_v53 = vadd.f32 %v3402_v0, %v1896_v12 }
 0x35e   : > { %v1708_v31 = vpack.c.bf16 %v1676_v50, %v1675_v10  ;;  %1989 = vst [vmem:[%s2564_s10 + $0x168] sm:$0xff] %v1897_v53 }
 0x35f   : > { %v1821_v29 = vpop.f32.mrf.mxu1 }
 0x360   : > { %v1822_v11 = vadd.f32 %v3402_v0, %v1821_v29  ;;  %1938 = vmatmul.bf16.gmra.mxu3 %v1708_v31 }
 0x362   : > { %1959 = vst [vmem:[%s2564_s10 + $0x78] sm:$0xff] %v1822_v11 }
 0x363   : > { %v1899_v63 = vpop.f32.mrf.mxu3 }
 0x364   : > { %v1900_v20 = vadd.f32 %v3402_v0, %v1899_v63 }
 0x366   : > { %1990 = vst [vmem:[%s2564_s10 + $0x170] sm:$0xff] %v1900_v20 }
 0x367   : > { %v1824_v54 = vpop.f32.mrf.mxu1 }
 0x368   : > { %v1825_v26 = vadd.f32 %v3402_v0, %v1824_v54 }
 0x36a   : > { %1960 = vst [vmem:[%s2564_s10 + $0x80] sm:$0xff] %v1825_v26 }
 0x36b   : > { %v1901_v2 = vpop.f32.mrf.mxu3 }
 0x36c   : > { %v1902_v32 = vadd.f32 %v3402_v0, %v1901_v2 }
 0x36e   : > { %1991 = vst [vmem:[%s2564_s10 + $0x178] sm:$0xff] %v1902_v32 }
 0x36f   : > { %v1826_v5 = vpop.f32.mrf.mxu1 }
 0x370   : > { %v1827_v57 = vadd.f32 %v3402_v0, %v1826_v5 }
 0x372   : > { %1961 = vst [vmem:[%s2564_s10 + $0x88] sm:$0xff] %v1827_v57 }
 0x373   : > { %v1904_v58 = vpop.f32.mrf.mxu3 }
 0x374   : > { %v1905_v22 = vadd.f32 %v3402_v0, %v1904_v58 }
 0x376   : > { %1992 = vst [vmem:[%s2564_s10 + $0x180] sm:$0xff] %v1905_v22 }
 0x377   : > { %v1829_v59 = vpop.f32.mrf.mxu1 }
 0x378   : > { %v1830_v45 = vadd.f32 %v3402_v0, %v1829_v59 }
 0x37a   : > { %1962 = vst [vmem:[%s2564_s10 + $0x90] sm:$0xff] %v1830_v45 }
 0x37b   : > { %v1906_v48 = vpop.f32.mrf.mxu3 }
 0x37c   : > { %v1907_v34 = vadd.f32 %v3402_v0, %v1906_v48 }
 0x37e   : > { %1993 = vst [vmem:[%s2564_s10 + $0x188] sm:$0xff] %v1907_v34 }
 0x37f   : > { %v1831_v23 = vpop.f32.mrf.mxu1 }
 0x380   : > { %v1832_v62 = vadd.f32 %v3402_v0, %v1831_v23 }
 0x382   : > { %1963 = vst [vmem:[%s2564_s10 + $0x98] sm:$0xff] %v1832_v62 }
 0x383   : > { %v1909_v13 = vpop.f32.mrf.mxu3 }
 0x384   : > { %v1910_v18 = vadd.f32 %v3402_v0, %v1909_v13 }
 0x386   : > { %1994 = vst [vmem:[%s2564_s10 + $0x190] sm:$0xff] %v1910_v18 }
 0x387   : > { %v1834_v4 = vpop.f32.mrf.mxu1 }
 0x388   : > { %v1835_v25 = vadd.f32 %v3402_v0, %v1834_v4 }
 0x38a   : > { %1964 = vst [vmem:[%s2564_s10 + $0xa0] sm:$0xff] %v1835_v25 }
 0x38b   : > { %v1911_v14 = vpop.f32.mrf.mxu3 }
 0x38c   : > { %v1912_v28 = vadd.f32 %v3402_v0, %v1911_v14 }
 0x38e   : > { %1995 = vst [vmem:[%s2564_s10 + $0x198] sm:$0xff] %v1912_v28 }
 0x38f   : > { %v1836_v1 = vpop.f32.mrf.mxu1 }
 0x390   : > { %v1837_v24 = vadd.f32 %v3402_v0, %v1836_v1 }
 0x392   : > { %1965 = vst [vmem:[%s2564_s10 + $0xa8] sm:$0xff] %v1837_v24 }
 0x393   : > { %v1914_v38 = vpop.f32.mrf.mxu3 }
 0x394   : > { %v1915_v3 = vadd.f32 %v3402_v0, %v1914_v38 }
 0x396   : > { %1996 = vst [vmem:[%s2564_s10 + $0x1a0] sm:$0xff] %v1915_v3 }
 0x397   : > { %v1839_v42 = vpop.f32.mrf.mxu1 }
 0x398   : > { %v1840_v47 = vadd.f32 %v3402_v0, %v1839_v42 }
 0x39a   : > { %1966 = vst [vmem:[%s2564_s10 + $0xb0] sm:$0xff] %v1840_v47 }
 0x39b   : > { %v1916_v51 = vpop.f32.mrf.mxu3 }
 0x39c   : > { %v1917_v56 = vadd.f32 %v3402_v0, %v1916_v51 }
 0x39e   : > { %1997 = vst [vmem:[%s2564_s10 + $0x1a8] sm:$0xff] %v1917_v56 }
 0x39f   : > { %v1841_v52 = vpop.f32.mrf.mxu1 }
 0x3a0   : > { %v1842_v30 = vadd.f32 %v3402_v0, %v1841_v52 }
 0x3a2   : > { %1967 = vst [vmem:[%s2564_s10 + $0xb8] sm:$0xff] %v1842_v30 }
 0x3a3   : > { %v1919_v15 = vpop.f32.mrf.mxu3 }
 0x3a4   : > { %v1920_v49 = vadd.f32 %v3402_v0, %v1919_v15 }
 0x3a6   : > { %1998 = vst [vmem:[%s2564_s10 + $0x1b0] sm:$0xff] %v1920_v49 }
 0x3a7   : > { %v1844_v36 = vpop.f32.mrf.mxu1 }
 0x3a8   : > { %v1845_v27 = vadd.f32 %v3402_v0, %v1844_v36 }
 0x3aa   : > { %1968 = vst [vmem:[%s2564_s10 + $0xc0] sm:$0xff] %v1845_v27 }
 0x3ab   : > { %v1921_v60 = vpop.f32.mrf.mxu3 }
 0x3ac   : > { %v1922_v19 = vadd.f32 %v3402_v0, %v1921_v60 }
 0x3ae   : > { %1999 = vst [vmem:[%s2564_s10 + $0x1b8] sm:$0xff] %v1922_v19 }
 0x3af   : > { %v1846_v37 = vpop.f32.mrf.mxu1 }
 0x3b0   : > { %v1847_v39 = vadd.f32 %v3402_v0, %v1846_v37 }
 0x3b2   : > { %1969 = vst [vmem:[%s2564_s10 + $0xc8] sm:$0xff] %v1847_v39 }
 0x3b3   : > { %v1924_v40 = vpop.f32.mrf.mxu3 }
 0x3b4   : > { %v1925_v46 = vadd.f32 %v3402_v0, %v1924_v40 }
 0x3b6   : > { %2000 = vst [vmem:[%s2564_s10 + $0x1c0] sm:$0xff] %v1925_v46 }
 0x3b7   : > { %v1849_v35 = vpop.f32.mrf.mxu1 }
 0x3b8   : > { %v1850_v44 = vadd.f32 %v3402_v0, %v1849_v35 }
 0x3ba   : > { %1970 = vst [vmem:[%s2564_s10 + $0xd0] sm:$0xff] %v1850_v44 }
 0x3bb   : > { %v1926_v61 = vpop.f32.mrf.mxu3 }
 0x3bc   : > { %v1927_v41 = vadd.f32 %v3402_v0, %v1926_v61 }
 0x3be   : > { %2001 = vst [vmem:[%s2564_s10 + $0x1c8] sm:$0xff] %v1927_v41 }
 0x3bf   : > { %v1851_v55 = vpop.f32.mrf.mxu1 }
 0x3c0   : > { %v1852_v8 = vadd.f32 %v3402_v0, %v1851_v55 }
 0x3c2   : > { %1971 = vst [vmem:[%s2564_s10 + $0xd8] sm:$0xff] %v1852_v8 }
 0x3c3   : > { %v1929_v33 = vpop.f32.mrf.mxu3 }
 0x3c4   : > { %v1930_v17 = vadd.f32 %v3402_v0, %v1929_v33 }
 0x3c6   : > { %2002 = vst [vmem:[%s2564_s10 + $0x1d0] sm:$0xff] %v1930_v17 }
 0x3c7   : > { %v1854_v9 = vpop.f32.mrf.mxu1 }
 0x3c8   : > { %v1855_v43 = vadd.f32 %v3402_v0, %v1854_v9 }
 0x3ca   : > { %1972 = vst [vmem:[%s2564_s10 + $0xe0] sm:$0xff] %v1855_v43 }
 0x3cb   : > { %v1931_v21 = vpop.f32.mrf.mxu3 }
 0x3cc   : > { %v1932_v6 = vadd.f32 %v3402_v0, %v1931_v21 }
 0x3ce   : > { %2003 = vst [vmem:[%s2564_s10 + $0x1d8] sm:$0xff] %v1932_v6 }
 0x3cf   : > { %v1856_v16 = vpop.f32.mrf.mxu1 }
 0x3d0   : > { %v1857_v7 = vadd.f32 %v3402_v0, %v1856_v16 }
 0x3d2   : > { %1973 = vst [vmem:[%s2564_s10 + $0xe8] sm:$0xff] %v1857_v7 }
 0x3d3   : > { %v1934_v12 = vpop.f32.mrf.mxu3 }
 0x3d4   : > { %v1935_v10 = vadd.f32 %v3402_v0, %v1934_v12 }
 0x3d6   : > { %2004 = vst [vmem:[%s2564_s10 + $0x1e0] sm:$0xff] %v1935_v10 }
 0x3d7   : > { %v1859_v50 = vpop.f32.mrf.mxu1 }
 0x3d8   : > { %v1860_v53 = vadd.f32 %v3402_v0, %v1859_v50 }
 0x3da   : > { %1974 = vst [vmem:[%s2564_s10 + $0xf0] sm:$0xff] %v1860_v53 }
 0x3db   : > { %v1936_v31 = vpop.f32.mrf.mxu3 }
 0x3dc   : > { %v1937_v29 = vadd.f32 %v3402_v0, %v1936_v31 }
 0x3de   : > { %2005 = vst [vmem:[%s2564_s10 + $0x1e8] sm:$0xff] %v1937_v29 }
 0x3df   : > { %v1861_v11 = vpop.f32.mrf.mxu1 }
 0x3e0   : > { %v1862_v63 = vadd.f32 %v3402_v0, %v1861_v11 }
 0x3e2   : > { %1975 = vst [vmem:[%s2564_s10 + $0xf8] sm:$0xff] %v1862_v63 }
 0x3e3   : > { %v1939_v20 = vpop.f32.mrf.mxu3 }
 0x3e4   : > { %v1940_v54 = vadd.f32 %v3402_v0, %v1939_v20 }
 0x3e6   : > { %2006 = vst [vmem:[%s2564_s10 + $0x1f0] sm:$0xff] %v1940_v54 }
 0x3eb   : > { %v1941_v26 = vpop.f32.mrf.mxu3 }
 0x3ec   : > { %v1942_v2 = vadd.f32 %v3402_v0, %v1941_v26 }
 0x3ee   : > { %2007 = vst [vmem:[%s2564_s10 + $0x1f8] sm:$0xff] %v1942_v2 }
 0x3ef PF: > { %s15_s22 = sadd.s32 1, %s2489_s22   ;;  %s3583_s18 = smov %s2481_s20 }
 0x3f0   : > { %p12_p11 = scmp.ge.s32.totalorder %s15_s22, 6   ;;  %s3584_s19 = smov %s2485_s21 }
 0x3f1   : > { %s3585_s20 = smov %s3588_s23  ;;  %s3586_s21 = smov %s3592_s24 }
 0x3f2   :  { %14 = sbr.rel (!%p12_p11) target bundleno = 3 (0x3), region = 88 }

</bundles_post_ra>
